<compile_context>
chip_gen: v5e
topology: v5e:2x2
jax: 0.10.0
libtpu: 0.0.40
codegen_flags: <defaults>
</compile_context>

<pallas_src>
import functools

import numpy as np
import jax
import jax.numpy as jnp
from jax import lax
from jax.experimental import pallas as pl
from jax.experimental.pallas import tpu as pltpu

# ---- constants mirroring the PyTorch module defaults -----------------------
CENTER_MOMENTUM = 0.9
STUDENT_TEMPERATURE = 0.1
TEACHER_TEMPERATURE = 0.04
WARMUP_TEACHER_TEMP = 0.04
MOMENTUM_TEACHER = 0.996
BN_EPS = 1e-5      # nn.BatchNorm1d default eps
L2_EPS = 1e-12     # F.normalize default eps


def cosine_scheduler(base_value, final_value, epochs, niter_per_ep,
                     warmup_epochs=0, start_warmup_value=0):
    warmup_schedule = np.array([])
    warmup_iters = warmup_epochs * niter_per_ep
    if warmup_epochs > 0:
        warmup_schedule = np.linspace(start_warmup_value, base_value, warmup_iters)
    iters = np.arange(epochs * niter_per_ep - warmup_iters)
    schedule = final_value + 0.5 * (base_value - final_value) * (
        1 + np.cos(np.pi * iters / len(iters)))
    schedule = np.concatenate((warmup_schedule, schedule))
    assert len(schedule) == epochs * niter_per_ep
    return schedule


# ---- shared math helpers -----------------------------------------------------
def _gelu_exact(x):
    # torch.nn.GELU default = exact erf formulation (kept for torch parity)
    return 0.5 * x * (1.0 + lax.erf(x * np.float32(1.0 / np.sqrt(2.0))))


def _pick_tile(dim, candidates=(2048, 1024, 512, 256, 128)):
    """Largest lane-dense tile (multiple of 128) that divides `dim`."""
    for c in candidates:
        if dim % c == 0:
            return c
    return dim


# =============================================================================
# Kernel A: DINOHead MLP -> L2-normalized bottleneck.
# Grid = one crop per step ("parallel"); weights resident via constant
# index_maps; BatchNorm over the crop batch via sublane reductions.
# =============================================================================
def dino_mlp_kernel(x_ref, w1_ref, b1_ref, w2_ref, b2_ref, w3_ref, b3_ref,
                    w4_ref, b4_ref, o_ref):
    def bn(h):
        # BatchNorm1d (train mode, gamma=1, beta=0, biased variance) over the
        # rows of this tile == one crop's batch.  Sublane reductions -> XLU.
        mean = jnp.mean(h, axis=0, keepdims=True)
        var = jnp.maximum(jnp.mean(h * h, axis=0, keepdims=True) - mean * mean,
                          np.float32(0.0))
        return (h - mean) * lax.rsqrt(var + np.float32(BN_EPS))

    def mm(a, w_ref_):
        # bf16 MXU matmul, f32 accumulation
        return jnp.dot(a.astype(jnp.bfloat16), w_ref_[...],
                       preferred_element_type=jnp.float32)

    h = mm(x_ref[...], w1_ref) + b1_ref[...]
    h = bn(h)
    h = mm(h, w2_ref) + b2_ref[...]
    h = _gelu_exact(bn(h))
    h = mm(h, w3_ref) + b3_ref[...]
    h = _gelu_exact(bn(h))
    h = mm(h, w4_ref) + b4_ref[...]
    # F.normalize(dim=-1, p=2): x / max(||x||, eps) == x * rsqrt(max(||x||^2, eps^2))
    sumsq = jnp.sum(h * h, axis=-1, keepdims=True)
    h = h * lax.rsqrt(jnp.maximum(sumsq, np.float32(L2_EPS * L2_EPS)))
    o_ref[...] = h.astype(o_ref.dtype)


def dino_mlp_forward(x, params, crop_batch):
    """x: (n_crops*crop_batch, in_dim) -> (rows, bottleneck) bf16."""
    w1, b1, w2, b2, w3, b3, w4, b4, _ = params
    M, in_dim = x.shape
    B = crop_batch
    n_crops = M // B
    assert M == n_crops * B
    assert B % 8 == 0, "crop_batch must be a multiple of 8 (sublane alignment)"
    H = w1.shape[1]
    bneck = w4.shape[1]

    x = x.astype(jnp.bfloat16)   # halve the only large streamed input

    const = lambda i: (0, 0)     # weights / biases stay VMEM-resident
    flops = 2 * M * (in_dim * H + 2 * H * H + H * bneck) + 16 * M * H
    transcendentals = 2 * M * H + M
    bytes_accessed = (2 * M * in_dim + 2 * (in_dim * H + 2 * H * H + H * bneck)
                      + 4 * (3 * H + bneck) + 2 * M * bneck)

    return pl.pallas_call(
        dino_mlp_kernel,
        out_shape=jax.ShapeDtypeStruct((M, bneck), jnp.bfloat16),
        grid=(n_crops,),
        in_specs=[pl.BlockSpec((B, in_dim), lambda i: (i, 0)),
                  pl.BlockSpec((in_dim, H), const), pl.BlockSpec((1, H), const),
                  pl.BlockSpec((H, H), const),      pl.BlockSpec((1, H), const),
                  pl.BlockSpec((H, H), const),      pl.BlockSpec((1, H), const),
                  pl.BlockSpec((H, bneck), const),  pl.BlockSpec((1, bneck), const)],
        out_specs=pl.BlockSpec((B, bneck), lambda i: (i, 0)),
        compiler_params=pltpu.CompilerParams(
            dimension_semantics=("parallel",),
            vmem_limit_bytes=48 * 1024 * 1024),
        cost_estimate=pl.CostEstimate(flops=int(flops),
                                      transcendentals=int(transcendentals),
                                      bytes_accessed=int(bytes_accessed)),
    )(x, w1, b1, w2, b2, w3, b3, w4, b4)


# =============================================================================
# Kernel F: fused weight-normed last Linear + DINO loss + center EMA.
# Grid = (pass, out_dim tile).  Pass 0: streaming logsumexp + center EMA.
# Pass 1: recompute logits tile, accumulate cross-entropy.  Logits never
# touch HBM.
# =============================================================================
def dino_fused_loss_kernel(ht_ref, hs_ref, wt_ref, ws_ref, c_ref,
                           loss_ref, newc_ref,
                           m_t, z_t, m_s, z_s, acc0, acc1,
                           *, ncrops, crop_batch, teacher_temp, student_temp,
                           center_momentum):
    p = pl.program_id(0)          # 0 = LSE / center pass, 1 = CE pass
    d = pl.program_id(1)
    nd = pl.num_programs(1)
    B = crop_batch

    # logits tiles for this out_dim tile (bf16 MXU matmul, f32 accumulation)
    t = jnp.dot(ht_ref[...], wt_ref[...], preferred_element_type=jnp.float32)
    s = jnp.dot(hs_ref[...], ws_ref[...], preferred_element_type=jnp.float32)
    c = c_ref[...]

    tl = (t - c) * np.float32(1.0 / teacher_temp)
    sl = s * np.float32(1.0 / student_temp)

    # update_center (no_grad in torch): EMA of teacher batch mean, per D-tile.
    # Written on both passes (same value) so the final HBM writeback is valid.
    bc = jnp.sum(t, axis=0, keepdims=True) * np.float32(1.0 / t.shape[0])
    newc_ref[...] = c * np.float32(center_momentum) + \
        bc * np.float32(1.0 - center_momentum)

    @pl.when(jnp.logical_and(p == 0, d == 0))
    def _():
        m_t[...] = jnp.full_like(m_t, -jnp.inf)
        z_t[...] = jnp.zeros_like(z_t)
        m_s[...] = jnp.full_like(m_s, -jnp.inf)
        z_s[...] = jnp.zeros_like(z_s)
        acc0[...] = jnp.zeros_like(acc0)
        acc1[...] = jnp.zeros_like(acc1)

    @pl.when(p == 0)
    def _():
        mt_new = jnp.maximum(m_t[...], jnp.max(tl, axis=-1, keepdims=True))
        z_t[...] = z_t[...] * jnp.exp(m_t[...] - mt_new) + \
            jnp.sum(jnp.exp(tl - mt_new), axis=-1, keepdims=True)
        m_t[...] = mt_new

        ms_new = jnp.maximum(m_s[...], jnp.max(sl, axis=-1, keepdims=True))
        z_s[...] = z_s[...] * jnp.exp(m_s[...] - ms_new) + \
            jnp.sum(jnp.exp(sl - ms_new), axis=-1, keepdims=True)
        m_s[...] = ms_new

    @pl.when(jnp.logical_and(p == 0, d == nd - 1))
    def _():
        # convert streaming (max, sum) into logsumexp in place for pass 1
        m_t[...] = m_t[...] + jnp.log(z_t[...])
        m_s[...] = m_s[...] + jnp.log(z_s[...])

    @pl.when(p == 1)
    def _():
        q = jnp.exp(tl - m_t[...])      # teacher softmax probs   (2B, TD)
        logp = sl - m_s[...]            # student log-softmax     (NB, TD)

        q0 = q[:B, :]
        q1 = q[B:, :]
        lp0 = logp[:B, :]
        lp1 = logp[B:2 * B, :]
        if ncrops > 2:
            lsum = logp[2 * B:3 * B, :]
            for v in range(3, ncrops):
                lsum = lsum + logp[v * B:(v + 1) * B, :]
            t0_target = lp1 + lsum      # all student views v != 0 (with q0)
            t1_target = lp0 + lsum      # all student views v != 1 (with q1)
        else:
            t0_target = lp1
            t1_target = lp0

        acc0[...] += jnp.sum(q0 * t0_target, axis=-1, keepdims=True)
        acc1[...] += jnp.sum(q1 * t1_target, axis=-1, keepdims=True)

    @pl.when(jnp.logical_and(p == 1, d == nd - 1))
    def _():
        n_terms = 2 * (ncrops - 1)
        total = jnp.sum(acc0[...], keepdims=True) + \
            jnp.sum(acc1[...], keepdims=True)
        loss_ref[...] = -total * np.float32(1.0 / (B * n_terms))


def dino_fused_loss(ht, hs, wlast_t, wlast_s, center, *, ncrops, crop_batch,
                    teacher_temp, student_temp, center_momentum, tile_d=None):
    """ht: (2B, bneck) bf16, hs: (ncrops*B, bneck) bf16 -> (loss, new_center)."""
    Tn, bneck = ht.shape
    Sn = hs.shape[0]
    D = wlast_t.shape[1]
    B = crop_batch
    assert Tn == 2 * B and Sn == ncrops * B
    assert B % 8 == 0, "crop_batch must be a multiple of 8 (sublane alignment)"
    if tile_d is None:
        tile_d = _pick_tile(D)
    nd = D // tile_d
    assert nd * tile_d == D

    kern = functools.partial(
        dino_fused_loss_kernel, ncrops=ncrops, crop_batch=B,
        teacher_temp=teacher_temp, student_temp=student_temp,
        center_momentum=center_momentum)

    flops = 2 * 2 * (Tn + Sn) * bneck * D + 12 * (Tn + Sn) * D
    transcendentals = 2 * (Tn + Sn) * D
    bytes_accessed = (2 * (Tn + Sn) * bneck + 2 * 2 * 2 * bneck * D
                      + 2 * 4 * D + 4 * D + 4)

    # TODO(synk): on v7x a leading "parallel" row-block axis (per-TC partial
    # accumulators) would let the second TensorCore share this kernel.
    loss, new_center = pl.pallas_call(
        kern,
        out_shape=(jax.ShapeDtypeStruct((1, 1), jnp.float32),
                   jax.ShapeDtypeStruct((1, D), jnp.float32)),
        grid=(2, nd),
        in_specs=[pl.BlockSpec((Tn, bneck), lambda p, d: (0, 0)),   # resident
                  pl.BlockSpec((Sn, bneck), lambda p, d: (0, 0)),   # resident
                  pl.BlockSpec((bneck, tile_d), lambda p, d: (0, d)),
                  pl.BlockSpec((bneck, tile_d), lambda p, d: (0, d)),
                  pl.BlockSpec((1, tile_d), lambda p, d: (0, d))],
        out_specs=(pl.BlockSpec((1, 1), lambda p, d: (0, 0)),
                   pl.BlockSpec((1, tile_d), lambda p, d: (0, d))),
        scratch_shapes=[pltpu.VMEM((Tn, 1), jnp.float32),
                        pltpu.VMEM((Tn, 1), jnp.float32),
                        pltpu.VMEM((Sn, 1), jnp.float32),
                        pltpu.VMEM((Sn, 1), jnp.float32),
                        pltpu.VMEM((B, 1), jnp.float32),
                        pltpu.VMEM((B, 1), jnp.float32)],
        compiler_params=pltpu.CompilerParams(
            dimension_semantics=("arbitrary", "arbitrary"),
            vmem_limit_bytes=32 * 1024 * 1024),
        cost_estimate=pl.CostEstimate(flops=int(flops),
                                      transcendentals=int(transcendentals),
                                      bytes_accessed=int(bytes_accessed)),
    )(ht, hs, wlast_t, wlast_s, center)
    return loss[0, 0], new_center


# ---- parameter init (deterministic, shapes per DINOHead.__init__) -----------
def init_head_params(key, in_dim, hidden, bottleneck, out_dim):
    ks = jax.random.split(key, 10)

    def lin_w(k, fan_in, fan_out):
        w = (jax.random.normal(k, (fan_in, fan_out), jnp.float32)
             / np.float32(np.sqrt(fan_in)))
        return w.astype(jnp.bfloat16)          # bf16 MXU path

    def lin_b(k, fan_out):
        return jax.random.normal(k, (1, fan_out), jnp.float32) * 0.01

    w1, b1 = lin_w(ks[0], in_dim, hidden), lin_b(ks[1], hidden)
    w2, b2 = lin_w(ks[2], hidden, hidden), lin_b(ks[3], hidden)
    w3, b3 = lin_w(ks[4], hidden, hidden), lin_b(ks[5], hidden)
    w4, b4 = lin_w(ks[6], hidden, bottleneck), lin_b(ks[7], bottleneck)
    # nn.utils.weight_norm(Linear(bottleneck, out_dim, bias=False)) with g = 1:
    # effective weight row = v_row / ||v_row||.
    v = jax.random.normal(ks[8], (out_dim, bottleneck), jnp.float32)
    wlast = (v / jnp.linalg.norm(v, axis=1, keepdims=True)).T.astype(jnp.bfloat16)
    return (w1, b1, w2, b2, w3, b3, w4, b4, wlast)


# ---- DINO module (functional JAX/Pallas version) ----------------------------
class DINOPallas:
    def __init__(self, in_dim, epochs, nSteps, head_hidden_dim, out_dim,
                 bottleneck_dim, ncrops):
        self.ncrops = ncrops
        self.center_momentum = CENTER_MOMENTUM
        self.student_temperature = STUDENT_TEMPERATURE
        self.nSteps = nSteps
        self.momentum_schedule = cosine_scheduler(MOMENTUM_TEACHER, 1, epochs, nSteps)
        wte = 30 if epochs > 30 else int(0.03 * epochs)
        self.teacher_temp_schedule = np.concatenate((
            np.linspace(WARMUP_TEACHER_TEMP, TEACHER_TEMPERATURE, wte),
            np.ones(epochs - wte) * TEACHER_TEMPERATURE))
        self.centering = jnp.zeros((in_dim,), jnp.float32)   # parity with nn.Parameter (unused in forward)
        self.center = jnp.zeros((1, out_dim), jnp.float32)   # registered buffer
        kt, ks = jax.random.split(jax.random.PRNGKey(0))
        self.teacher_params = init_head_params(kt, in_dim, head_hidden_dim,
                                               bottleneck_dim, out_dim)
        self.student_params = init_head_params(ks, in_dim, head_hidden_dim,
                                               bottleneck_dim, out_dim)

    def forward(self, dataStep, epoch):
        # TODO(synk): the student/teacher backbones are external modules passed
        # into DINO.forward in PyTorch; here they are treated as identity on
        # precomputed (B, in_dim) features.
        B = dataStep[0].shape[0]
        teacher_feats = jnp.concatenate(dataStep[:2], axis=0)   # first 2 crops
        student_feats = jnp.concatenate(dataStep, axis=0)       # all crops
        ht = dino_mlp_forward(teacher_feats, self.teacher_params, B)
        hs = dino_mlp_forward(student_feats, self.student_params, B)
        teacher_temp = float(self.teacher_temp_schedule[epoch])
        loss, new_center = dino_fused_loss(
            ht, hs, self.teacher_params[-1], self.student_params[-1],
            self.center, ncrops=self.ncrops, crop_batch=B,
            teacher_temp=teacher_temp,
            student_temp=self.student_temperature,
            center_momentum=self.center_momentum)
        self.center = new_center       # update_center (stateful in torch)
        return loss


# ---- pure-JAX reference (same math, no Pallas) for sanity checks ------------
def _ref_bn(h, n_crops, B):
    H = h.shape[-1]
    h3 = h.reshape(n_crops, B, H)
    mean = jnp.mean(h3, axis=1, keepdims=True)
    var = jnp.maximum(jnp.mean(h3 * h3, axis=1, keepdims=True) - mean * mean, 0.0)
    return ((h3 - mean) * lax.rsqrt(var + BN_EPS)).reshape(n_crops * B, H)


def ref_mlp(x, params, B):
    w1, b1, w2, b2, w3, b3, w4, b4, _ = params
    n_crops = x.shape[0] // B

    def mm(a, w):
        return jnp.dot(a.astype(jnp.bfloat16), w,
                       preferred_element_type=jnp.float32)

    h = _ref_bn(mm(x, w1) + b1, n_crops, B)
    h = _gelu_exact(_ref_bn(mm(h, w2) + b2, n_crops, B))
    h = _gelu_exact(_ref_bn(mm(h, w3) + b3, n_crops, B))
    h = mm(h, w4) + b4
    sumsq = jnp.sum(h * h, axis=-1, keepdims=True)
    h = h * lax.rsqrt(jnp.maximum(sumsq, L2_EPS * L2_EPS))
    return h.astype(jnp.bfloat16)


def ref_logits(h, wlast):
    return jnp.dot(h.astype(jnp.bfloat16), wlast,
                   preferred_element_type=jnp.float32)


def ref_loss(t, s, center, ncrops, B, teacher_temp, student_temp):
    q = jax.nn.softmax((t - center) / teacher_temp, axis=-1)
    logp = jax.nn.log_softmax(s / student_temp, axis=-1)
    total, n = 0.0, 0
    for iq in range(2):
        qi = q[iq * B:(iq + 1) * B]
        for v in range(ncrops):
            if v == iq:
                continue
            total += jnp.mean(jnp.sum(-qi * logp[v * B:(v + 1) * B], axis=-1))
            n += 1
    return total / n


if __name__ == "__main__":
    # small shapes consistent with the module (lane/sublane-friendly multiples)
    IN_DIM, HIDDEN, BOTTLENECK, OUT_DIM = 128, 256, 128, 384
    B, NCROPS, EPOCHS, NSTEPS, EPOCH = 8, 6, 10, 5, 3

    dino = DINOPallas(IN_DIM, EPOCHS, NSTEPS, HIDDEN, OUT_DIM, BOTTLENECK, NCROPS)

    key = jax.random.PRNGKey(0)
    crop_keys = jax.random.split(key, NCROPS)
    dataStep = [jax.random.normal(k, (B, IN_DIM), jnp.float32) for k in crop_keys]

    loss = dino.forward(dataStep, EPOCH)
    loss = jax.block_until_ready(loss)
    new_center = jax.block_until_ready(dino.center)

    # --- sanity checks against a pure-JAX reference with the same math -------
    t_feats = jnp.concatenate(dataStep[:2], axis=0)
    s_feats = jnp.concatenate(dataStep, axis=0)

    # Kernel A (bottleneck) check
    ht_k = jax.block_until_ready(dino_mlp_forward(t_feats, dino.teacher_params, B))
    hs_k = jax.block_until_ready(dino_mlp_forward(s_feats, dino.student_params, B))
    ht_ref = ref_mlp(t_feats, dino.teacher_params, B)
    hs_ref = ref_mlp(s_feats, dino.student_params, B)
    np.testing.assert_allclose(np.asarray(ht_k.astype(jnp.float32)),
                               np.asarray(ht_ref.astype(jnp.float32)),
                               atol=2e-2, rtol=0)
    np.testing.assert_allclose(np.asarray(hs_k.astype(jnp.float32)),
                               np.asarray(hs_ref.astype(jnp.float32)),
                               atol=2e-2, rtol=0)

    # fused loss / center check
    t_logits = ref_logits(ht_ref, dino.teacher_params[-1])
    s_logits = ref_logits(hs_ref, dino.student_params[-1])
    teacher_temp = float(dino.teacher_temp_schedule[EPOCH])
    l_ref = ref_loss(t_logits, s_logits, jnp.zeros((1, OUT_DIM), jnp.float32),
                     NCROPS, B, teacher_temp, STUDENT_TEMPERATURE)
    c_ref = jnp.zeros((1, OUT_DIM), jnp.float32) * CENTER_MOMENTUM + \
        jnp.sum(t_logits, axis=0, keepdims=True) / t_logits.shape[0] * \
        (1.0 - CENTER_MOMENTUM)

    assert bool(jnp.isfinite(loss)), "loss is not finite"
    np.testing.assert_allclose(np.asarray(new_center), np.asarray(c_ref),
                               atol=1e-3, rtol=0)
    assert abs(float(loss) - float(l_ref)) < 1e-2, (float(loss), float(l_ref))

    print("KERNEL_OK")
</pallas_src>

<mosaic_0001>
module attributes {stable_mosaic.version = 11 : i64} {
  func.func @dino_mlp_kernel(%arg0: i32, %arg1: memref<8x128xbf16, #tpu.memory_space<vmem>>, %arg2: memref<128x256xbf16, #tpu.memory_space<vmem>>, %arg3: memref<1x256xf32, #tpu.memory_space<vmem>>, %arg4: memref<256x256xbf16, #tpu.memory_space<vmem>>, %arg5: memref<1x256xf32, #tpu.memory_space<vmem>>, %arg6: memref<256x256xbf16, #tpu.memory_space<vmem>>, %arg7: memref<1x256xf32, #tpu.memory_space<vmem>>, %arg8: memref<256x128xbf16, #tpu.memory_space<vmem>>, %arg9: memref<1x128xf32, #tpu.memory_space<vmem>>, %arg10: memref<8x128xbf16, #tpu.memory_space<vmem>>) attributes {dimension_semantics = [#tpu.dimension_semantics<parallel>], iteration_bounds = array<i64: 2>, scalar_prefetch = 0 : i64, scratch_operands = 0 : i64, tpu.core_type = #tpu.core_type<tc>, window_params = [{transform_indices = @transform_0, window_bounds = array<i64: 8, 128>}, {pipeline_mode = #tpu.pipeline_mode<synchronous>, transform_indices = @transform_1, window_bounds = array<i64: 128, 256>}, {pipeline_mode = #tpu.pipeline_mode<synchronous>, transform_indices = @transform_2, window_bounds = array<i64: 1, 256>}, {pipeline_mode = #tpu.pipeline_mode<synchronous>, transform_indices = @transform_3, window_bounds = array<i64: 256, 256>}, {pipeline_mode = #tpu.pipeline_mode<synchronous>, transform_indices = @transform_4, window_bounds = array<i64: 1, 256>}, {pipeline_mode = #tpu.pipeline_mode<synchronous>, transform_indices = @transform_5, window_bounds = array<i64: 256, 256>}, {pipeline_mode = #tpu.pipeline_mode<synchronous>, transform_indices = @transform_6, window_bounds = array<i64: 1, 256>}, {pipeline_mode = #tpu.pipeline_mode<synchronous>, transform_indices = @transform_7, window_bounds = array<i64: 256, 128>}, {pipeline_mode = #tpu.pipeline_mode<synchronous>, transform_indices = @transform_8, window_bounds = array<i64: 1, 128>}, {transform_indices = @transform_9, window_bounds = array<i64: 8, 128>}]} {
    %c0 = arith.constant 0 : index
    %c0_0 = arith.constant 0 : index
    %0 = vector.load %arg1[%c0, %c0_0] : memref<8x128xbf16, #tpu.memory_space<vmem>>, vector<8x128xbf16>
    %c0_1 = arith.constant 0 : index
    %c0_2 = arith.constant 0 : index
    %1 = vector.load %arg2[%c0_1, %c0_2] : memref<128x256xbf16, #tpu.memory_space<vmem>>, vector<128x256xbf16>
    %cst = arith.constant dense<0.000000e+00> : vector<8x256xf32>
    %2 = tpu.matmul %0, %1, %cst {dimension_numbers = #tpu.dot_dimension_numbers<[1], [0], [0], [1], [0, 0, 1, 1], [], []>} : vector<8x128xbf16>, vector<128x256xbf16>, vector<8x256xf32> -> vector<8x256xf32>
    %c0_3 = arith.constant 0 : index
    %c0_4 = arith.constant 0 : index
    %3 = vector.load %arg3[%c0_3, %c0_4] : memref<1x256xf32, #tpu.memory_space<vmem>>, vector<1x256xf32>
    %4 = vector.broadcast %3 : vector<1x256xf32> to vector<8x256xf32>
    %5 = arith.addf %2, %4 : vector<8x256xf32>
    %cst_5 = arith.constant dense<0.000000e+00> : vector<256xf32>
    %6 = vector.multi_reduction <add>, %5, %cst_5 [0] : vector<8x256xf32> to vector<256xf32>
    %7 = vector.shape_cast %6 : vector<256xf32> to vector<1x256xf32>
    %cst_6 = arith.constant 8.000000e+00 : f32
    %8 = vector.broadcast %cst_6 : f32 to vector<1x256xf32>
    %9 = arith.divf %7, %8 : vector<1x256xf32>
    %10 = arith.mulf %5, %5 : vector<8x256xf32>
    %cst_7 = arith.constant dense<0.000000e+00> : vector<256xf32>
    %11 = vector.multi_reduction <add>, %10, %cst_7 [0] : vector<8x256xf32> to vector<256xf32>
    %12 = vector.shape_cast %11 : vector<256xf32> to vector<1x256xf32>
    %cst_8 = arith.constant 8.000000e+00 : f32
    %13 = vector.broadcast %cst_8 : f32 to vector<1x256xf32>
    %14 = arith.divf %12, %13 : vector<1x256xf32>
    %15 = arith.mulf %9, %9 : vector<1x256xf32>
    %16 = arith.subf %14, %15 : vector<1x256xf32>
    %cst_9 = arith.constant 0.000000e+00 : f32
    %17 = vector.broadcast %cst_9 : f32 to vector<1x256xf32>
    %18 = arith.maximumf %16, %17 : vector<1x256xf32>
    %19 = vector.broadcast %9 : vector<1x256xf32> to vector<8x256xf32>
    %20 = arith.subf %5, %19 : vector<8x256xf32>
    %cst_10 = arith.constant 9.99999974E-6 : f32
    %21 = vector.broadcast %cst_10 : f32 to vector<1x256xf32>
    %22 = arith.addf %18, %21 : vector<1x256xf32>
    %23 = math.rsqrt %22 : vector<1x256xf32>
    %24 = vector.broadcast %23 : vector<1x256xf32> to vector<8x256xf32>
    %25 = arith.mulf %20, %24 : vector<8x256xf32>
    %26 = arith.truncf %25 : vector<8x256xf32> to vector<8x256xbf16>
    %c0_11 = arith.constant 0 : index
    %c0_12 = arith.constant 0 : index
    %27 = vector.load %arg4[%c0_11, %c0_12] : memref<256x256xbf16, #tpu.memory_space<vmem>>, vector<256x256xbf16>
    %cst_13 = arith.constant dense<0.000000e+00> : vector<8x256xf32>
    %28 = tpu.matmul %26, %27, %cst_13 {dimension_numbers = #tpu.dot_dimension_numbers<[1], [0], [0], [1], [0, 0, 1, 1], [], []>} : vector<8x256xbf16>, vector<256x256xbf16>, vector<8x256xf32> -> vector<8x256xf32>
    %c0_14 = arith.constant 0 : index
    %c0_15 = arith.constant 0 : index
    %29 = vector.load %arg5[%c0_14, %c0_15] : memref<1x256xf32, #tpu.memory_space<vmem>>, vector<1x256xf32>
    %30 = vector.broadcast %29 : vector<1x256xf32> to vector<8x256xf32>
    %31 = arith.addf %28, %30 : vector<8x256xf32>
    %cst_16 = arith.constant dense<0.000000e+00> : vector<256xf32>
    %32 = vector.multi_reduction <add>, %31, %cst_16 [0] : vector<8x256xf32> to vector<256xf32>
    %33 = vector.shape_cast %32 : vector<256xf32> to vector<1x256xf32>
    %cst_17 = arith.constant 8.000000e+00 : f32
    %34 = vector.broadcast %cst_17 : f32 to vector<1x256xf32>
    %35 = arith.divf %33, %34 : vector<1x256xf32>
    %36 = arith.mulf %31, %31 : vector<8x256xf32>
    %cst_18 = arith.constant dense<0.000000e+00> : vector<256xf32>
    %37 = vector.multi_reduction <add>, %36, %cst_18 [0] : vector<8x256xf32> to vector<256xf32>
    %38 = vector.shape_cast %37 : vector<256xf32> to vector<1x256xf32>
    %cst_19 = arith.constant 8.000000e+00 : f32
    %39 = vector.broadcast %cst_19 : f32 to vector<1x256xf32>
    %40 = arith.divf %38, %39 : vector<1x256xf32>
    %41 = arith.mulf %35, %35 : vector<1x256xf32>
    %42 = arith.subf %40, %41 : vector<1x256xf32>
    %cst_20 = arith.constant 0.000000e+00 : f32
    %43 = vector.broadcast %cst_20 : f32 to vector<1x256xf32>
    %44 = arith.maximumf %42, %43 : vector<1x256xf32>
    %45 = vector.broadcast %35 : vector<1x256xf32> to vector<8x256xf32>
    %46 = arith.subf %31, %45 : vector<8x256xf32>
    %cst_21 = arith.constant 9.99999974E-6 : f32
    %47 = vector.broadcast %cst_21 : f32 to vector<1x256xf32>
    %48 = arith.addf %44, %47 : vector<1x256xf32>
    %49 = math.rsqrt %48 : vector<1x256xf32>
    %50 = vector.broadcast %49 : vector<1x256xf32> to vector<8x256xf32>
    %51 = arith.mulf %46, %50 : vector<8x256xf32>
    %cst_22 = arith.constant 5.000000e-01 : f32
    %52 = vector.broadcast %cst_22 : f32 to vector<8x256xf32>
    %53 = arith.mulf %52, %51 : vector<8x256xf32>
    %cst_23 = arith.constant 0.707106769 : f32
    %54 = vector.broadcast %cst_23 : f32 to vector<8x256xf32>
    %55 = arith.mulf %51, %54 : vector<8x256xf32>
    %56 = math.erf %55 : vector<8x256xf32>
    %cst_24 = arith.constant 1.000000e+00 : f32
    %57 = vector.broadcast %cst_24 : f32 to vector<8x256xf32>
    %58 = arith.addf %57, %56 : vector<8x256xf32>
    %59 = arith.mulf %53, %58 : vector<8x256xf32>
    %60 = arith.truncf %59 : vector<8x256xf32> to vector<8x256xbf16>
    %c0_25 = arith.constant 0 : index
    %c0_26 = arith.constant 0 : index
    %61 = vector.load %arg6[%c0_25, %c0_26] : memref<256x256xbf16, #tpu.memory_space<vmem>>, vector<256x256xbf16>
    %cst_27 = arith.constant dense<0.000000e+00> : vector<8x256xf32>
    %62 = tpu.matmul %60, %61, %cst_27 {dimension_numbers = #tpu.dot_dimension_numbers<[1], [0], [0], [1], [0, 0, 1, 1], [], []>} : vector<8x256xbf16>, vector<256x256xbf16>, vector<8x256xf32> -> vector<8x256xf32>
    %c0_28 = arith.constant 0 : index
    %c0_29 = arith.constant 0 : index
    %63 = vector.load %arg7[%c0_28, %c0_29] : memref<1x256xf32, #tpu.memory_space<vmem>>, vector<1x256xf32>
    %64 = vector.broadcast %63 : vector<1x256xf32> to vector<8x256xf32>
    %65 = arith.addf %62, %64 : vector<8x256xf32>
    %cst_30 = arith.constant dense<0.000000e+00> : vector<256xf32>
    %66 = vector.multi_reduction <add>, %65, %cst_30 [0] : vector<8x256xf32> to vector<256xf32>
    %67 = vector.shape_cast %66 : vector<256xf32> to vector<1x256xf32>
    %cst_31 = arith.constant 8.000000e+00 : f32
    %68 = vector.broadcast %cst_31 : f32 to vector<1x256xf32>
    %69 = arith.divf %67, %68 : vector<1x256xf32>
    %70 = arith.mulf %65, %65 : vector<8x256xf32>
    %cst_32 = arith.constant dense<0.000000e+00> : vector<256xf32>
    %71 = vector.multi_reduction <add>, %70, %cst_32 [0] : vector<8x256xf32> to vector<256xf32>
    %72 = vector.shape_cast %71 : vector<256xf32> to vector<1x256xf32>
    %cst_33 = arith.constant 8.000000e+00 : f32
    %73 = vector.broadcast %cst_33 : f32 to vector<1x256xf32>
    %74 = arith.divf %72, %73 : vector<1x256xf32>
    %75 = arith.mulf %69, %69 : vector<1x256xf32>
    %76 = arith.subf %74, %75 : vector<1x256xf32>
    %cst_34 = arith.constant 0.000000e+00 : f32
    %77 = vector.broadcast %cst_34 : f32 to vector<1x256xf32>
    %78 = arith.maximumf %76, %77 : vector<1x256xf32>
    %79 = vector.broadcast %69 : vector<1x256xf32> to vector<8x256xf32>
    %80 = arith.subf %65, %79 : vector<8x256xf32>
    %cst_35 = arith.constant 9.99999974E-6 : f32
    %81 = vector.broadcast %cst_35 : f32 to vector<1x256xf32>
    %82 = arith.addf %78, %81 : vector<1x256xf32>
    %83 = math.rsqrt %82 : vector<1x256xf32>
    %84 = vector.broadcast %83 : vector<1x256xf32> to vector<8x256xf32>
    %85 = arith.mulf %80, %84 : vector<8x256xf32>
    %cst_36 = arith.constant 5.000000e-01 : f32
    %86 = vector.broadcast %cst_36 : f32 to vector<8x256xf32>
    %87 = arith.mulf %86, %85 : vector<8x256xf32>
    %cst_37 = arith.constant 0.707106769 : f32
    %88 = vector.broadcast %cst_37 : f32 to vector<8x256xf32>
    %89 = arith.mulf %85, %88 : vector<8x256xf32>
    %90 = math.erf %89 : vector<8x256xf32>
    %cst_38 = arith.constant 1.000000e+00 : f32
    %91 = vector.broadcast %cst_38 : f32 to vector<8x256xf32>
    %92 = arith.addf %91, %90 : vector<8x256xf32>
    %93 = arith.mulf %87, %92 : vector<8x256xf32>
    %94 = arith.truncf %93 : vector<8x256xf32> to vector<8x256xbf16>
    %c0_39 = arith.constant 0 : index
    %c0_40 = arith.constant 0 : index
    %95 = vector.load %arg8[%c0_39, %c0_40] : memref<256x128xbf16, #tpu.memory_space<vmem>>, vector<256x128xbf16>
    %cst_41 = arith.constant dense<0.000000e+00> : vector<8x128xf32>
    %96 = tpu.matmul %94, %95, %cst_41 {dimension_numbers = #tpu.dot_dimension_numbers<[1], [0], [0], [1], [0, 0, 1, 1], [], []>} : vector<8x256xbf16>, vector<256x128xbf16>, vector<8x128xf32> -> vector<8x128xf32>
    %c0_42 = arith.constant 0 : index
    %c0_43 = arith.constant 0 : index
    %97 = vector.load %arg9[%c0_42, %c0_43] : memref<1x128xf32, #tpu.memory_space<vmem>>, vector<1x128xf32>
    %98 = vector.broadcast %97 : vector<1x128xf32> to vector<8x128xf32>
    %99 = arith.addf %96, %98 : vector<8x128xf32>
    %100 = arith.mulf %99, %99 : vector<8x128xf32>
    %cst_44 = arith.constant dense<0.000000e+00> : vector<8xf32>
    %101 = vector.multi_reduction <add>, %100, %cst_44 [1] : vector<8x128xf32> to vector<8xf32>
    %102 = vector.shape_cast %101 : vector<8xf32> to vector<8x1xf32>
    %cst_45 = arith.constant 1.000000e-24 : f32
    %103 = vector.broadcast %cst_45 : f32 to vector<8x1xf32>
    %104 = arith.maximumf %102, %103 : vector<8x1xf32>
    %105 = math.rsqrt %104 : vector<8x1xf32>
    %106 = vector.broadcast %105 : vector<8x1xf32> to vector<8x128xf32>
    %107 = arith.mulf %99, %106 : vector<8x128xf32>
    %108 = arith.truncf %107 : vector<8x128xf32> to vector<8x128xbf16>
    %c0_46 = arith.constant 0 : index
    %c0_47 = arith.constant 0 : index
    %109 = vector.load %arg10[%c0_46, %c0_47] : memref<8x128xbf16, #tpu.memory_space<vmem>>, vector<8x128xbf16>
    tpu.vector_store %arg10[%c0_46, %c0_47], %108 {strides = array<i32>} : memref<8x128xbf16, #tpu.memory_space<vmem>>, vector<8x128xbf16>,
    return
  }
  func.func @transform_0(%arg0: i32) -> (i32, i32) {
    %c0_i32 = arith.constant 0 : i32
    %c0_i32_0 = arith.constant 0 : i32
    return %arg0, %c0_i32 : i32, i32
  }
  func.func @transform_1(%arg0: i32) -> (i32, i32) {
    %c0_i32 = arith.constant 0 : i32
    %c0_i32_0 = arith.constant 0 : i32
    %c0_i32_1 = arith.constant 0 : i32
    return %c0_i32, %c0_i32_0 : i32, i32
  }
  func.func @transform_2(%arg0: i32) -> (i32, i32) {
    %c0_i32 = arith.constant 0 : i32
    %c0_i32_0 = arith.constant 0 : i32
    %c0_i32_1 = arith.constant 0 : i32
    return %c0_i32, %c0_i32_0 : i32, i32
  }
  func.func @transform_3(%arg0: i32) -> (i32, i32) {
    %c0_i32 = arith.constant 0 : i32
    %c0_i32_0 = arith.constant 0 : i32
    %c0_i32_1 = arith.constant 0 : i32
    return %c0_i32, %c0_i32_0 : i32, i32
  }
  func.func @transform_4(%arg0: i32) -> (i32, i32) {
    %c0_i32 = arith.constant 0 : i32
    %c0_i32_0 = arith.constant 0 : i32
    %c0_i32_1 = arith.constant 0 : i32
    return %c0_i32, %c0_i32_0 : i32, i32
  }
  func.func @transform_5(%arg0: i32) -> (i32, i32) {
    %c0_i32 = arith.constant 0 : i32
    %c0_i32_0 = arith.constant 0 : i32
    %c0_i32_1 = arith.constant 0 : i32
    return %c0_i32, %c0_i32_0 : i32, i32
  }
  func.func @transform_6(%arg0: i32) -> (i32, i32) {
    %c0_i32 = arith.constant 0 : i32
    %c0_i32_0 = arith.constant 0 : i32
    %c0_i32_1 = arith.constant 0 : i32
    return %c0_i32, %c0_i32_0 : i32, i32
  }
  func.func @transform_7(%arg0: i32) -> (i32, i32) {
    %c0_i32 = arith.constant 0 : i32
    %c0_i32_0 = arith.constant 0 : i32
    %c0_i32_1 = arith.constant 0 : i32
    return %c0_i32, %c0_i32_0 : i32, i32
  }
  func.func @transform_8(%arg0: i32) -> (i32, i32) {
    %c0_i32 = arith.constant 0 : i32
    %c0_i32_0 = arith.constant 0 : i32
    %c0_i32_1 = arith.constant 0 : i32
    return %c0_i32, %c0_i32_0 : i32, i32
  }
  func.func @transform_9(%arg0: i32) -> (i32, i32) {
    %c0_i32 = arith.constant 0 : i32
    %c0_i32_0 = arith.constant 0 : i32
    return %arg0, %c0_i32 : i32, i32
  }
}

</mosaic_0001>

<bundles_post_ra>
// kernel: tpu_custom_call.1
= control target key start
LH: loop header
LB: loop body
LE: loop exit
PB: predicated region body
PF: predicated region fallthrough
CT: control target
= control target key end

     0   :  { %s2992_s0 = inlined_call_operand.hbm [shape: bf16[16,128], index: 0, kind: input, shape index: {}]   ;;  %s2993_s1 = inlined_call_operand.hbm [shape: bf16[128,256], index: 1, kind: input, shape index: {}]   ;;  %s2994_s2 = inlined_call_operand.hbm [shape: f32[1,256], index: 2, kind: input, shape index: {}]   ;;  %s2995_s3 = inlined_call_operand.hbm [shape: bf16[256,256], index: 3, kind: input, shape index: {}]   ;;  %s2996_s4 = inlined_call_operand.vmem [shape: f32[1,256], index: 4, kind: input, shape index: {}]   ;;  %s2997_s5 = inlined_call_operand.hbm [shape: bf16[256,256], index: 5, kind: input, shape index: {}]   ;;  %s2998_s6 = inlined_call_operand.vmem [shape: f32[1,256], index: 6, kind: input, shape index: {}]   ;;  %s2999_s7 = inlined_call_operand.hbm [shape: bf16[256,128], index: 7, kind: input, shape index: {}]   ;;  %s3000_s8 = inlined_call_operand.vmem [shape: f32[1,128], index: 8, kind: input, shape index: {}]   ;;  %s3001_s9 = inlined_call_operand.hbm [shape: bf16[16,128], index: 9, kind: output, shape index: {}]  }
   0x1   :  { %3002 = sst [smem:[#allocation19_spill]] %s2993_s1 }
   0x2   :  { %3003 = sst [smem:[#allocation20_spill]] %s2994_s2 }
   0x3   :  { %3004 = sst [smem:[#allocation21_spill]] %s2995_s3 }
   0x4   :  { %14 = vsyncpa [#allocation3], 0 }
   0x5   :  { %16 = vsyncpa [#allocation3 + $0x1], 0 }
   0x6   :  { %17 = vsyncpa [#allocation6], 0 }
   0x7   :  { %18 = vsyncpa [#allocation9], 0 }
   0x8   :  { %19 = vsyncpa [#allocation12], 0 }
   0x9   :  { %20 = vsyncpa [#allocation4], 0 }
   0xa   :  { %22 = vsyncpa [#allocation4 + $0x1], 0  ;;  %s2697_s30 = smov 0   ;;  %s2699_s10 = smov 0  }
   0xb   :  { %s2701_s11 = smov 0   ;;  %s2703_s12 = smov 0  }
   0xc LB: > { %s3005_s1 = sld [smem:[#allocation19_spill]]  ;;  %s2721_s16 = sadd.s32 4294967295, %s2635_s12   ;;  %s2635_s12 = sphi %s2703_s12, %s3018_s12   ;;  %s2631_s11 = sphi %s2701_s11, %s3017_s11   ;;  %s2627_s10 = sphi %s2699_s10, %s3016_s10   ;;  %s2623_s30 = sphi %s2697_s30, %s3015_s30  }
   0xd   : > { %p1745_p0 = scmp.ge.s32.totalorder %s2635_s12, 1  ;;  %p49_p1 = scmp.eq.s32.totalorder %s2721_s16, 0 }
   0xe   : > { %p253_p2 = scmp.lt.s32.totalorder %s2635_s12, 3  ;;  %s2637_s18 = smov [#allocation5]  }
   0xf   : > { %s266_s19 = sshll.u32 %s2637_s18, 4  ;;  %s3007_s3 = sld [smem:[#allocation21_spill]]  ;;  %s267_s19 = int_to_ptr.vmem [resolvable:$true] %s266_s19 }
  0x10   : > { %p2726_p3 = pnand %p1745_p0, %p253_p2  ;;  %s3009_s2 = sld [smem:[#allocation20_spill]] }
  0x11   : > { %s2638_s27 = smov [#allocation8]   ;;  %s2639_s29 = smov 128  }
  0x12   : > { %s264_s15 = sshll.u32 %s3005_s1, 4  ;;  %p2274_p4 = pneg %p2726_p3  ;;  %s265_s15 = int_to_ptr.hbm [resolvable:$true] %s264_s15 }
  0x13   : > { %s292_s28 = sshll.u32 %s2638_s27, 4  ;;  %s2640_s13 = smov 8   ;;  %s293_s28 = int_to_ptr.vmem [resolvable:$true] %s292_s28 }
  0x14   : > { %p2738_p6 = pnand %p2274_p4, %p49_p1  ;;  %s307_s20 = sshll.u32 %s2997_s5, 4  ;;  %s308_s20 = int_to_ptr.hbm [resolvable:$true] %s307_s20 }
  0x15   : > { %s290_s22 = sshll.u32 %s3007_s3, 4  ;;  %s2641_s21 = smov [#allocation7]   ;;  %s291_s22 = int_to_ptr.hbm [resolvable:$true] %s290_s22 }
  0x16   : > { %s279_s26 = sshll.u32 %s3009_s2, 4  ;;  %s281_s1 = sshll.u32 %s2641_s21, 4  ;;  %s280_s26 = int_to_ptr.hbm [resolvable:$true] %s279_s26  ;;  %s282_s1 = int_to_ptr.vmem [resolvable:$true] %s281_s1 }
  0x17   : > { %2277 = dma.hbm_to_vmem [thread:$0]  (!%p2738_p6), %s265_s15, 2048, %s267_s19, [#allocation6], %s2639_s29, %s2639_s29, %s2640_s13  }
  0x18   : > { %2283 = dma.hbm_to_vmem [thread:$0]  (!%p2738_p6), %s291_s22, 4096, %s293_s28, [#allocation9], %s2639_s29, %s2639_s29, %s2640_s13  }
  0x19   : > { %2280 = dma.hbm_to_vmem [thread:$0]  (!%p2738_p6), %s280_s26, 32, %s282_s1, [#allocation6]  }
  0x1a   : > { %s2642_s15 = smov [#allocation10]   ;;  %s324_s25 = sshll.u32 %s2999_s7, 4  ;;  %s325_s25 = int_to_ptr.hbm [resolvable:$true] %s324_s25 }
  0x1b   : > { %s309_s19 = sshll.u32 %s2642_s15, 4  ;;  %s2643_s27 = smov [#allocation11]   ;;  %s310_s19 = int_to_ptr.vmem [resolvable:$true] %s309_s19 }
  0x1c   : > { %2286 = dma.hbm_to_vmem [thread:$0]  (!%p2738_p6), %s308_s20, 4096, %s310_s19, [#allocation9], %s2639_s29, %s2639_s29, %s2640_s13  }
  0x1d   : > { %s326_s1 = sshll.u32 %s2643_s27, 4  ;;  %s2644_s26 = smov 64   ;;  %s327_s1 = int_to_ptr.vmem [resolvable:$true] %s326_s1 }
  0x1e   : > { %s2645_s28 = smov 4   ;;  %s1744_s14 = sadd.s32 4294967294, %s2635_s12  }
  0x1f   : > { %2289 = dma.hbm_to_vmem [thread:$0]  (!%p2738_p6), %s325_s25, 2048, %s327_s1, [#allocation12], %s2644_s26, %s2644_s26, %s2645_s28  }
  0x20   : > { %s2763_s18 = sadd.s32 1, %s2635_s12   ;;  %s35_s21 = sadd.s32 1, %s2631_s11 }
  0x21   : > { %s32_s15 = ssub.s32 %s2635_s12, %s2763_s18  ;;  %p42_p7 = scmp.ne.s32.totalorder %s2631_s11, %s2627_s10 }
  0x22   : > { %p33_p8 = scmp.eq.s32.totalorder %s32_s15, 0  ;;  %p43_p9 = scmp.eq.s32.totalorder %s2635_s12, 0 }
  0x23   : > { %p48_p10 = scmp.ne.s32.totalorder %s2627_s10, %s2623_s30  ;;  %p240_p11 = scmp.eq.s32.totalorder %s2721_s16, 1 }
  0x24   : > { %s2775_s29 = scalar_select %p33_p8, %s2631_s11, %s35_s21  }
  0x25   : > { %p2779_p12 = por %p49_p1, %p48_p10  ;;  %p2783_p13 = por %p240_p11, %p42_p7 }
  0x26   : > { %p246_p0 = scmp.eq.s32.totalorder %s1744_s14, 1  ;;  %p44_p2 = por %p43_p9, %p42_p7 }
  0x27   : > { %s343_s20 = sand.u32 1, %s2631_s11   ;;  %p2303_p6 = scmp.lt.s32.totalorder %s2635_s12, 2 }
  0x28   : > { %p2788_p4 = por %p246_p0, %p48_p10  ;;  %s1752_s22 = sshll.u32 %s343_s20, 2 }
  0x29   : > { %s1753_s24 = sshll.u32 %s2635_s12, 2  ;;  %s347_s28 = scalar_lea.vmem [#allocation2], %s1752_s22 }
  0x2a   : > { %s351_s1 = scalar_lea.hbm %s2992_s0, %s1753_s24  ;;  %s355_s21 = sshll.u32 %s347_s28, 4  ;;  %s356_s21 = int_to_ptr.vmem [resolvable:$true] %s355_s21 }
  0x2b   : > { %s353_s26 = sshll.u32 %s351_s1, 4  ;;  %p2797_p8 = pnand %p2303_p6, %p44_p2  ;;  %s354_s26 = int_to_ptr.hbm [resolvable:$true] %s353_s26 }
  0x2c   : > { %s344_s15 = scalar_lea.sflag [#allocation3], %s343_s20  ;;  %s2527_s2 = sshra.s32 %s354_s26, 4  ;;  %s2528_s2 = int_to_ptr.hbm [resolvable:$true] %s2527_s2 }
  0x2d   : > { %s2529_s3 = scalar_lea.hbm %s2528_s2, 4  ;;  %p2531_p9 = pneg %p2797_p8 }
  0x2e   : > { %p2530_p7 = scmp.ne.s32.totalorder %s2528_s2, %s2529_s3  ;;  %s2534_s22 = scalar_lea.hbm %s2992_s0, 8 }
  0x2f   : > { %p2535_p0 = scmp.lt.s32.totalorder %s2528_s2, %s2992_s0  ;;  %p2536_p2 = scmp.lt.s32.totalorder %s2534_s22, %s2529_s3 }
  0x30   : > { %p2532_p10 = pnand %p2531_p9, %p2530_p7 }
  0x31   : > { %p2537_p6 = por %p2536_p2, %p2535_p0 }
  0x32   : > { %p2533_p11 = pneg %p2532_p10 }
  0x34   : > { %p2538_p5 = pnand %p2537_p6, %p2533_p11 }
  0x36   : > { %2541 = shalt.err (!%p2538_p5)
}
  0x37   : > { %2293 = dma.hbm_to_vmem [thread:$0]  (!%p2797_p8), %s354_s26, 64, %s356_s21, %s344_s15  }
  0x38   : > { %364 = sbr.rel (%p2726_p3) target bundleno = 1019 (0x3fb), region = 56  ;;  %s2814_s20 = sand.u32 (!%p2726_p3), 1, %s2627_s10  }
  0x39   : > { %s1755_s28 = sshll.u32 (!%p2726_p3), %s2814_s20, 2  ;;  %s367_s24 = scalar_lea.sflag (!%p2726_p3), [#allocation3], %s2814_s20 }
  0x3a   : > { %s2820_s2 = scalar_lea.vmem (!%p2726_p3), [#allocation2], %s1755_s28 }
  0x3d   : > { %2602 = dma.done.wait (%p2779_p12), %s367_s24, 64  }
  0x3e   : > { %2604 = vsyncadd (%p2779_p12), %s367_s24, 4294967232 }
  0x3f   : > { %2606 = dma.done.wait (%p49_p1), [#allocation6], 2080  }
  0x40   : > { %2608 = vsyncadd (%p49_p1), [#allocation6], 4294965216 }
  0x41   : > { %2610 = dma.done.wait (%p49_p1), [#allocation9], 8192  }
  0x42   : > { %2612 = vsyncadd (%p49_p1), [#allocation9], 4294959104 }
  0x43   : > { %2614 = dma.done.wait (%p49_p1), [#allocation12], 2048  }
  0x44   : > { %2616 = vsyncadd (%p49_p1), [#allocation12], 4294965248  ;;  %v1820_v0 = vld [vmem:[#allocation5 + $0x70] sm:$0xf]  ;;  %v2169_v1 = vld [vmem:[#allocation5 + $0x74] sm:$0xf0] }
  0x45   : > { %v2168_v2 = vld [vmem:[#allocation5 + $0x74] sm:$0xf]  ;;  %v1821_v3 = vor.u32 %v2169_v1, %v1820_v0  ;;  %v1822_v4 = vld [vmem:[#allocation5 + $0x78] sm:$0xf0]  ;;  %v1812_v5 = vld [vmem:[#allocation5 + $0x60] sm:$0xf] }
  0x46   : > { %v2167_v6 = vld [vmem:[#allocation5 + $0x64] sm:$0xf0]  ;;  %v1825_v7 = vor.u32 %v2168_v2, %v1822_v4  ;;  %v2166_v8 = vld [vmem:[#allocation5 + $0x64] sm:$0xf]  ;;  %v1814_v9 = vld [vmem:[#allocation5 + $0x68] sm:$0xf0] }
  0x47   : > { %534 = vmatpush.bf16.msra.mxu0 %v1821_v3  ;;  %v1813_v10 = vor.u32 %v2167_v6, %v1812_v5  ;;  %v1817_v11 = vor.u32 %v2166_v8, %v1814_v9  ;;  %v1804_v12 = vld [vmem:[#allocation5 + $0x50] sm:$0xf]  ;;  %v2165_v13 = vld [vmem:[#allocation5 + $0x54] sm:$0xf0]  ;;  %v2164_v14 = vld [vmem:[#allocation5 + $0x54] sm:$0xf] }
  0x48   : > { %547 = vmatpush.bf16.msra.mxu1 %v1825_v7  ;;  %v1806_v15 = vld [vmem:[#allocation5 + $0x58] sm:$0xf0]  ;;  %v1805_v16 = vor.u32 %v2165_v13, %v1804_v12  ;;  %v1796_v18 = vld [vmem:[#allocation5 + $0x40] sm:$0xf]  ;;  %v2163_v19 = vld [vmem:[#allocation5 + $0x44] sm:$0xf0] }
  0x49   : > { %v1809_v17 = vor.u32 %v2164_v14, %v1806_v15  ;;  %v2162_v20 = vld [vmem:[#allocation5 + $0x44] sm:$0xf]  ;;  %v1798_v21 = vld [vmem:[#allocation5 + $0x48] sm:$0xf0]  ;;  %v1797_v22 = vor.u32 %v2163_v19, %v1796_v18  ;;  %v1788_v24 = vld [vmem:[#allocation5 + $0x30] sm:$0xf] }
  0x4a   : > { %v1801_v23 = vor.u32 %v2162_v20, %v1798_v21  ;;  %v2161_v25 = vld [vmem:[#allocation5 + $0x34] sm:$0xf0]  ;;  %v2160_v26 = vld [vmem:[#allocation5 + $0x34] sm:$0xf]  ;;  %v1790_v27 = vld [vmem:[#allocation5 + $0x38] sm:$0xf0] }
  0x4b   : > { %535 = vmatpush.bf16.msra.mxu0 %v1813_v10  ;;  %v1789_v28 = vor.u32 %v2161_v25, %v1788_v24  ;;  %v1793_v29 = vor.u32 %v2160_v26, %v1790_v27  ;;  %v1780_v30 = vld [vmem:[#allocation5 + $0x20] sm:$0xf]  ;;  %v2159_v31 = vld [vmem:[#allocation5 + $0x24] sm:$0xf0]  ;;  %v2158_v32 = vld [vmem:[#allocation5 + $0x24] sm:$0xf] }
  0x4c   : > { %548 = vmatpush.bf16.msra.mxu1 %v1817_v11  ;;  %v1782_v33 = vld [vmem:[#allocation5 + $0x28] sm:$0xf0]  ;;  %v1781_v34 = vor.u32 %v2159_v31, %v1780_v30  ;;  %v1772_v36 = vld [vmem:[#allocation5 + $0x10] sm:$0xf]  ;;  %v2157_v37 = vld [vmem:[#allocation5 + $0x14] sm:$0xf0] }
  0x4d   : > { %v1785_v35 = vor.u32 %v2158_v32, %v1782_v33  ;;  %v2156_v38 = vld [vmem:[#allocation5 + $0x14] sm:$0xf]  ;;  %v1774_v39 = vld [vmem:[#allocation5 + $0x18] sm:$0xf0]  ;;  %v1773_v40 = vor.u32 %v2157_v37, %v1772_v36  ;;  %v1764_v42 = vld [vmem:[#allocation5] sm:$0xf] }
  0x4e   : > { %v1777_v41 = vor.u32 %v2156_v38, %v1774_v39  ;;  %v2155_v43 = vld [vmem:[#allocation5 + $0x4] sm:$0xf0]  ;;  %v2154_v44 = vld [vmem:[#allocation5 + $0x4] sm:$0xf]  ;;  %v1766_v45 = vld [vmem:[#allocation5 + $0x8] sm:$0xf0] }
  0x4f   : > { %536 = vmatpush.bf16.msra.mxu0 %v1805_v16  ;;  %v1765_v46 = vor.u32 %v2155_v43, %v1764_v42  ;;  %v1769_v47 = vor.u32 %v2154_v44, %v1766_v45  ;;  %v431_v48 = vld [vmem:[%s2820_s2] sm:$0xf]  ;;  %v1884_v49 = vld [vmem:[#allocation8 + $0x70] sm:$0xf]  ;;  %v1876_v60 = vld [vmem:[#allocation8 + $0x60] sm:$0xf] }
  0x50   : > { %549 = vmatpush.bf16.msra.mxu1 %v1809_v17  ;;  %v2185_v50 = vld [vmem:[#allocation8 + $0x74] sm:$0xf0]  ;;  %v1948_v51 = vld [vmem:[#allocation8 + $0xf0] sm:$0xf]  ;;  %v2184_v54 = vld [vmem:[#allocation8 + $0x74] sm:$0xf] }
  0x51   : > { %v1885_v52 = vor.u32 %v2185_v50, %v1884_v49  ;;  %v2201_v53 = vld [vmem:[#allocation8 + $0xf4] sm:$0xf0]  ;;  %v1886_v55 = vld [vmem:[#allocation8 + $0x78] sm:$0xf0]  ;;  %v2200_v58 = vld [vmem:[#allocation8 + $0xf4] sm:$0xf] }
  0x52   : > { %v1949_v56 = vor.u32 %v2201_v53, %v1948_v51  ;;  %v1889_v57 = vor.u32 %v2184_v54, %v1886_v55  ;;  %v1950_v59 = vld [vmem:[#allocation8 + $0xf8] sm:$0xf0]  ;;  %v2183_v62 = vld [vmem:[#allocation8 + $0x64] sm:$0xf0]  ;;  %v1940_v63 = vld [vmem:[#allocation8 + $0xe0] sm:$0xf] }
  0x53   : > { %537 = vmatpush.bf16.msra.mxu0 %v1797_v22  ;;  %829 = vmatpush.bf16.msra.mxu2 %v1885_v52  ;;  %v1953_v61 = vor.u32 %v2200_v58, %v1950_v59  ;;  %v2199_v0 = vld [vmem:[#allocation8 + $0xe4] sm:$0xf0]  ;;  %v1877_v1 = vor.u32 %v2183_v62, %v1876_v60  ;;  %v2182_v3 = vld [vmem:[#allocation8 + $0x64] sm:$0xf]  ;;  %v1878_v4 = vld [vmem:[#allocation8 + $0x68] sm:$0xf0] }
  0x54   : > { %550 = vmatpush.bf16.msra.mxu1 %v1801_v23  ;;  %842 = vmatpush.bf16.msra.mxu3 %v1949_v56  ;;  %v1941_v2 = vor.u32 %v2199_v0, %v1940_v63  ;;  %v2198_v5 = vld [vmem:[#allocation8 + $0xe4] sm:$0xf]  ;;  %v1881_v6 = vor.u32 %v2182_v3, %v1878_v4  ;;  %v1942_v7 = vld [vmem:[#allocation8 + $0xe8] sm:$0xf0]  ;;  %v1868_v8 = vld [vmem:[#allocation8 + $0x50] sm:$0xf] }
  0x55   : > { %v2181_v9 = vld [vmem:[#allocation8 + $0x54] sm:$0xf0]  ;;  %v2646_v10 = vmov 8.0   ;;  %v1945_v11 = vor.u32 %v2198_v5, %v1942_v7  ;;  %v1932_v12 = vld [vmem:[#allocation8 + $0xd0] sm:$0xf]  ;;  %s2151_s15 = sshll.u32 %s2721_s16, 2 }
  0x56   : > { %2353 = vrcp.f32 %v2646_v10  ;;  %v2197_v13 = vld [vmem:[#allocation8 + $0xd4] sm:$0xf0]  ;;  %v2180_v14 = vld [vmem:[#allocation8 + $0x54] sm:$0xf]  ;;  %v1869_v15 = vor.u32 %v2181_v9, %v1868_v8  ;;  %v1870_v16 = vld [vmem:[#allocation8 + $0x58] sm:$0xf0]  ;;  %s1621_s27 = scalar_lea.hbm %s3001_s9, %s2151_s15 }
  0x57   : > { %538 = vmatpush.bf16.msra.mxu0 %v1789_v28  ;;  %830 = vmatpush.bf16.msra.mxu2 %v1877_v1  ;;  %v2196_v17 = vld [vmem:[#allocation8 + $0xd4] sm:$0xf]  ;;  %v1934_v18 = vld [vmem:[#allocation8 + $0xd8] sm:$0xf0]  ;;  %v1933_v19 = vor.u32 %v2197_v13, %v1932_v12  ;;  %v1873_v20 = vor.u32 %v2180_v14, %v1870_v16  ;;  %v1860_v21 = vld [vmem:[#allocation8 + $0x40] sm:$0xf] }
  0x58   : > { %551 = vmatpush.bf16.msra.mxu1 %v1793_v29  ;;  %843 = vmatpush.bf16.msra.mxu3 %v1941_v2  ;;  %v2179_v22 = vld [vmem:[#allocation8 + $0x44] sm:$0xf0]  ;;  %v1924_v23 = vld [vmem:[#allocation8 + $0xc0] sm:$0xf]  ;;  %v1937_v24 = vor.u32 %v2196_v17, %v1934_v18  ;;  %v2178_v26 = vld [vmem:[#allocation8 + $0x44] sm:$0xf] }
  0x59   : > { %v2195_v25 = vld [vmem:[#allocation8 + $0xc4] sm:$0xf0]  ;;  %v1862_v27 = vld [vmem:[#allocation8 + $0x48] sm:$0xf0]  ;;  %v2194_v28 = vld [vmem:[#allocation8 + $0xc4] sm:$0xf]  ;;  %v1861_v32 = vor.u32 %v2179_v22, %v1860_v21 }
  0x5a   : > { %v1926_v29 = vld [vmem:[#allocation8 + $0xc8] sm:$0xf0]  ;;  %v448_v31 = vld [vmem:[#allocation7] sm:$0x3]  ;;  %v1925_v33 = vor.u32 %v2195_v25, %v1924_v23  ;;  %v2177_v36 = vld [vmem:[#allocation8 + $0x34] sm:$0xf0] }
  0x5b   : > { %539 = vmatpush.bf16.msra.mxu0 %v1781_v34  ;;  %831 = vmatpush.bf16.msra.mxu2 %v1869_v15  ;;  %v1865_v34 = vor.u32 %v2178_v26, %v1862_v27  ;;  %v1916_v37 = vld [vmem:[#allocation8 + $0xb0] sm:$0xf]  ;;  %v1929_v38 = vor.u32 %v2194_v28, %v1926_v29  ;;  %v2193_v39 = vld [vmem:[#allocation8 + $0xb4] sm:$0xf0]  ;;  %v2192_v42 = vld [vmem:[#allocation8 + $0xb4] sm:$0xf] }
  0x5c   : > { %552 = vmatpush.bf16.msra.mxu1 %v1785_v35  ;;  %v2839_v30 = vpop.eup %2353  ;;  %844 = vmatpush.bf16.msra.mxu3 %v1933_v19  ;;  %v1852_v35 = vld [vmem:[#allocation8 + $0x30] sm:$0xf]  ;;  %v1918_v43 = vld [vmem:[#allocation8 + $0xb8] sm:$0xf0]  ;;  %v450_v45 = vperm.slane %v448_v31, 0  ;;  %s430_s1 = scalar_lea.vmem [#allocation13], %s1755_s28 }
  0x5d   : > { %v573_v44 = vmul.f32 8.0, %v2839_v30  ;;  %v1844_v50 = vld [vmem:[#allocation8 + $0x20] sm:$0xf]  ;;  %v2175_v51 = vld [vmem:[#allocation8 + $0x24] sm:$0xf0]  ;;  %v1921_v53 = vor.u32 %v2192_v42, %v1918_v43  ;;  %vm577_vm0 = vweird.f32 %v2839_v30  ;;  %s1623_s24 = sshll.u32 %s430_s1, 4  ;;  %s1624_s24 = int_to_ptr.vmem [resolvable:$true] %s1623_s24 }
  0x5e   : > { %v1908_v52 = vld [vmem:[#allocation8 + $0xa0] sm:$0xf]  ;;  %v2191_v54 = vld [vmem:[#allocation8 + $0xa4] sm:$0xf0]  ;;  %v2174_v55 = vld [vmem:[#allocation8 + $0x24] sm:$0xf]  ;;  %v1845_v63 = vor.u32 %v2175_v51, %v1844_v50 }
  0x5f   : > { %540 = vmatpush.bf16.msra.mxu0 %v1773_v40  ;;  %v2176_v40 = vld [vmem:[#allocation8 + $0x34] sm:$0xf]  ;;  %832 = vmatpush.bf16.msra.mxu2 %v1861_v32  ;;  %v1846_v56 = vld [vmem:[#allocation8 + $0x28] sm:$0xf0]  ;;  %v2190_v58 = vld [vmem:[#allocation8 + $0xa4] sm:$0xf]  ;;  %v1909_v2 = vor.u32 %v2191_v54, %v1908_v52 }
  0x60   : > { %553 = vmatpush.bf16.msra.mxu1 %v1777_v41  ;;  %v1854_v41 = vld [vmem:[#allocation8 + $0x38] sm:$0xf0]  ;;  %845 = vmatpush.bf16.msra.mxu3 %v1925_v33  ;;  %v1910_v59 = vld [vmem:[#allocation8 + $0xa8] sm:$0xf0]  ;;  %v574_v60 = vsub.f32 1.0, %v573_v44  ;;  %v1849_v3 = vor.u32 %v2174_v55, %v1846_v56  ;;  %s1625_s2 = sshll.u32 %s1621_s27, 4  ;;  %s1626_s2 = int_to_ptr.hbm [resolvable:$true] %s1625_s2 }
  0x61   : > { %v1857_v49 = vor.u32 %v2176_v40, %v1854_v41  ;;  %v1836_v0 = vld [vmem:[#allocation8 + $0x10] sm:$0xf]  ;;  %v2173_v4 = vld [vmem:[#allocation8 + $0x14] sm:$0xf0]  ;;  %v1913_v9 = vor.u32 %v2190_v58, %v1910_v59  ;;  %v2172_v10 = vld [vmem:[#allocation8 + $0x14] sm:$0xf] }
  0x62   : > { %v1900_v5 = vld [vmem:[#allocation8 + $0x90] sm:$0xf]  ;;  %v2188_v14 = vld [vmem:[#allocation8 + $0x94] sm:$0xf]  ;;  %v1902_v15 = vld [vmem:[#allocation8 + $0x98] sm:$0xf0]  ;;  %v575_v16 = vmul.f32 %v2839_v30, %v574_v60  ;;  %v1837_v19 = vor.u32 %v2173_v4, %v1836_v0 }
  0x63   : > { %541 = vmatpush.bf16.msra.mxu0 %v1765_v46  ;;  %v451_v46 = vperm.slane %v448_v31, 1  ;;  %v2171_v21 = vld [vmem:[#allocation8 + $0x4] sm:$0xf0]  ;;  %v1892_v26 = vld [vmem:[#allocation8 + $0x80] sm:$0xf]  ;;  %v1905_v31 = vor.u32 %v2188_v14, %v1902_v15  ;;  %s1611_s16 = scalar_lea.sflag [#allocation4], %s2814_s20 }
  0x64   : > { %554 = vmatpush.bf16.msra.mxu1 %v1769_v47  ;;  %v1853_v47 = vor.u32 %v2177_v36, %v1852_v35  ;;  %v2187_v27 = vld [vmem:[#allocation8 + $0x84] sm:$0xf0]  ;;  %v2170_v32 = vld [vmem:[#allocation8 + $0x4] sm:$0xf]  ;;  %v1830_v33 = vld [vmem:[#allocation8 + $0x8] sm:$0xf0] }
  0x65   : > { %s2571_s3 = sshra.s32 %s1626_s2, 4  ;;  %s2577_s21 = scalar_lea.hbm %s3001_s9, 8  ;;  %s2572_s3 = int_to_ptr.hbm [resolvable:$true] %s2571_s3 }
  0x66   : > { %542 = vmatmul.bf16.vlgmr.msra.gmra.mxu0 %v431_v48  ;;  %833 = vmatpush.bf16.msra.mxu2 %v1853_v47  ;;  %s2573_s17 = scalar_lea.hbm %s2572_s3, 4  ;;  %p2578_p12 = scmp.lt.s32.totalorder %s2572_s3, %s3001_s9 }
  0x67   : > { %555 = vmatmul.bf16.vlgmr.msra.gmra.mxu1 %v431_v48  ;;  %855 = vmatpush.bf16.msrb.mxu0 %v1889_v57  ;;  %v1917_v48 = vor.u32 %v2193_v39, %v1916_v37  ;;  %v2186_v37 = vld [vmem:[#allocation8 + $0x84] sm:$0xf]  ;;  %v576_v39 = vadd.f32 %v2839_v30, %v575_v16  ;;  %p2574_p1 = scmp.ne.s32.totalorder %s2572_s3, %s2573_s17  ;;  %p2579_p8 = scmp.lt.s32.totalorder %s2577_s21, %s2573_s17 }
  0x68   : > { %868 = vmatpush.bf16.msrb.mxu1 %v1953_v61 }
  0x69   : > { %846 = vmatpush.bf16.msra.mxu3 %v1917_v48  ;;  %v2858_v52 = vsel %vm577_vm0, %v2839_v30, %v576_v39  ;;  %v2080_v39 = vld [vmem:[#allocation10 + $0xf8] sm:$0xf0]  ;;  %p2575_p3 = pnand %p2574_p1, %p2783_p13  ;;  %p2580_p7 = por %p2579_p8, %p2578_p12 }
  0x6a   : > { %834 = vmatpush.bf16.msra.mxu2 %v1845_v63 }
  0x6b   : > { %856 = vmatpush.bf16.msrb.mxu0 %v1881_v6  ;;  %v2189_v6 = vld [vmem:[#allocation8 + $0x94] sm:$0xf0]  ;;  %p2576_p5 = pneg %p2575_p3 }
  0x6c   : > { %869 = vmatpush.bf16.msrb.mxu1 %v1945_v11  ;;  %v1838_v11 = vld [vmem:[#allocation8 + $0x18] sm:$0xf0] }
  0x6d   : > { %847 = vmatpush.bf16.msra.mxu3 %v1909_v2  ;;  %v1841_v25 = vor.u32 %v2172_v10, %v1838_v11  ;;  %p2581_p9 = pnand %p2580_p7, %p2576_p5 }
  0x6e   : > { %835 = vmatpush.bf16.msra.mxu2 %v1837_v19 }
  0x6f   : > { %857 = vmatpush.bf16.msrb.mxu0 %v1873_v20  ;;  %v1828_v20 = vld [vmem:[#allocation8] sm:$0xf] }
  0x70   : > { %870 = vmatpush.bf16.msrb.mxu1 %v1937_v24  ;;  %v1901_v24 = vor.u32 %v2189_v6, %v1900_v5  ;;  %v1829_v42 = vor.u32 %v2171_v21, %v1828_v20 }
  0x72   : > { %848 = vmatpush.bf16.msra.mxu3 %v1901_v24  ;;  %836 = vmatpush.bf16.msra.mxu2 %v1829_v42 }
  0x73   : > { %858 = vmatpush.bf16.msrb.mxu0 %v1865_v34 }
  0x74   : > { %871 = vmatpush.bf16.msrb.mxu1 %v1929_v38  ;;  %v1894_v38 = vld [vmem:[#allocation8 + $0x88] sm:$0xf0] }
  0x77   : > { %859 = vmatpush.bf16.msrb.mxu0 %v1857_v49  ;;  %v1897_v49 = vor.u32 %v2186_v37, %v1894_v38 }
  0x78   : > { %872 = vmatpush.bf16.msrb.mxu1 %v1921_v53 }
  0x7b   : > { %860 = vmatpush.bf16.msrb.mxu0 %v1849_v3 }
  0x7c   : > { %873 = vmatpush.bf16.msrb.mxu1 %v1913_v9 }
  0x7f   : > { %861 = vmatpush.bf16.msrb.mxu0 %v1841_v25 }
  0x80   : > { %874 = vmatpush.bf16.msrb.mxu1 %v1905_v31 }
  0x84   : > { %875 = vmatpush.bf16.msrb.mxu1 %v1897_v49  ;;  %v2217_v49 = vld [vmem:[#allocation10 + $0x74] sm:$0xf0] }
  0xe3   : > { %v543_v57 = vpop.f32.mrf.mxu0 }
  0xe4   : > { %v2842_v61 = vadd.f32 %v543_v57, %v450_v45  ;;  %v556_v62 = vpop.f32.mrf.mxu1  ;;  %v1893_v45 = vor.u32 %v2187_v27, %v1892_v26 }
  0xe5   : > { %v2844_v1 = vadd.f32 %v556_v62, %v451_v46  ;;  %v1833_v46 = vor.u32 %v2170_v32, %v1830_v33 }
  0xe6   : > { %v560_v7 = vrot.slane %v2842_v61, 4  ;;  %v581_v8 = vmul.f32 %v2842_v61, %v2842_v61  ;;  %849 = vmatpush.bf16.msra.mxu3 %v1893_v45  ;;  %v2014_v45 = vld [vmem:[#allocation10 + $0x70] sm:$0xf] }
  0xe7   : > { %v566_v12 = vrot.slane %v2844_v1, 4  ;;  %v582_v13 = vmul.f32 %v2844_v1, %v2844_v1  ;;  %862 = vmatpush.bf16.msrb.mxu0 %v1833_v46 }
  0xe8   : > { %v561_v17 = vadd.f32 %v560_v7, %v2842_v61  ;;  %v583_v18 = vrot.slane %v581_v8, 4 }
  0xe9   : > { %v567_v22 = vadd.f32 %v566_v12, %v2844_v1  ;;  %v589_v23 = vrot.slane %v582_v13, 4 }
  0xea   : > { %v562_v28 = vrot.slane %v561_v17, 2  ;;  %v584_v29 = vadd.f32 %v583_v18, %v581_v8 }
  0xeb   : > { %v568_v34 = vrot.slane %v567_v22, 2  ;;  %v590_v35 = vadd.f32 %v589_v23, %v582_v13  ;;  %v545_v36 = vpop.f32.mrf.mxu0 }
  0xec   : > { %v585_v40 = vrot.slane %v584_v29, 2  ;;  %v558_v41 = vpop.f32.mrf.mxu1  ;;  %v563_v43 = vadd.f32 %v562_v28, %v561_v17  ;;  %v2232_v36 = vld [vmem:[#allocation10 + $0xf4] sm:$0xf] }
  0xed   : > { %v591_v44 = vrot.slane %v590_v35, 2  ;;  %v569_v47 = vadd.f32 %v568_v34, %v567_v22  ;;  %v2231_v41 = vld [vmem:[#allocation10 + $0xe4] sm:$0xf0]  ;;  %v2083_v42 = vor.u32 %v2232_v36, %v2080_v39  ;;  %v2048_v39 = vld [vmem:[#allocation10 + $0xb8] sm:$0xf0] }
  0xee   : > { %v586_v48 = vadd.f32 %v585_v40, %v584_v29  ;;  %v564_v50 = vrot.slane %v563_v43, 1  ;;  %v2070_v40 = vld [vmem:[#allocation10 + $0xe0] sm:$0xf] }
  0xef   : > { %v592_v51 = vadd.f32 %v591_v44, %v590_v35  ;;  %v570_v53 = vrot.slane %v569_v47, 1  ;;  %v2233_v35 = vld [vmem:[#allocation10 + $0xf4] sm:$0xf0]  ;;  %v2072_v44 = vld [vmem:[#allocation10 + $0xe8] sm:$0xf0]  ;;  %1270 = vmatpush.bf16.msra.mxu1 %v2083_v42 }
  0xf0   : > { %v587_v54 = vrot.slane %v586_v48, 1  ;;  %v565_v55 = vadd.f32 %v564_v50, %v563_v43  ;;  %v2230_v43 = vld [vmem:[#allocation10 + $0xe4] sm:$0xf]  ;;  %v2216_v50 = vld [vmem:[#allocation10 + $0x74] sm:$0xf] }
  0xf1   : > { %v593_v56 = vrot.slane %v592_v51, 1  ;;  %v571_v57 = vadd.f32 %v570_v53, %v569_v47  ;;  %v2075_v53 = vor.u32 %v2230_v43, %v2072_v44 }
  0xf2   : > { %v579_v58 = vmul.f32 %v2858_v52, %v565_v55  ;;  %v588_v59 = vadd.f32 %v587_v54, %v586_v48  ;;  %v2071_v48 = vor.u32 %v2231_v41, %v2070_v40  ;;  %v2015_v54 = vor.u32 %v2217_v49, %v2014_v45  ;;  %v2016_v55 = vld [vmem:[#allocation10 + $0x78] sm:$0xf0]  ;;  %v1990_v40 = vld [vmem:[#allocation10 + $0x40] sm:$0xf]  ;;  %v2211_v41 = vld [vmem:[#allocation10 + $0x44] sm:$0xf0] }
  0xf3   : > { %v580_v60 = vmul.f32 %v2858_v52, %v571_v57  ;;  %v594_v62 = vadd.f32 %v593_v56, %v592_v51  ;;  %v2062_v56 = vld [vmem:[#allocation10 + $0xd0] sm:$0xf]  ;;  %v2229_v57 = vld [vmem:[#allocation10 + $0xd4] sm:$0xf0]  ;;  %1271 = vmatpush.bf16.msra.mxu1 %v2075_v53  ;;  %v2038_v53 = vld [vmem:[#allocation10 + $0xa0] sm:$0xf] }
  0xf4   : > { %v595_v63 = vmul.f32 %v588_v59, %v2858_v52  ;;  %v597_v0 = vmul.f32 %v579_v58, %v579_v58  ;;  %v603_v20 = vsub.f32 %v2842_v61, %v579_v58  ;;  %v663_v61 = vld [vmem:[%s2996_s4] sm:$0x3]  ;;  %1231 = vmatpush.bf16.msrb.mxu2 %v2015_v54 }
  0xf5   : > { %v596_v30 = vmul.f32 %v594_v62, %v2858_v52  ;;  %v598_v2 = vmul.f32 %v580_v60, %v580_v60  ;;  %v604_v23 = vsub.f32 %v2844_v1, %v580_v60  ;;  %v666_v29 = vperm.slane %v663_v61, 1  ;;  %v2078_v1 = vld [vmem:[#allocation10 + $0xf0] sm:$0xf] }
  0xf6   : > { %v599_v3 = vsub.f32 %v595_v63, %v597_v0  ;;  %v665_v34 = vperm.slane %v663_v61, 0  ;;  %v2079_v38 = vor.u32 %v2233_v35, %v2078_v1  ;;  %v2019_v63 = vor.u32 %v2216_v50, %v2016_v55  ;;  %v2228_v0 = vld [vmem:[#allocation10 + $0xd4] sm:$0xf]  ;;  %v2046_v61 = vld [vmem:[#allocation10 + $0xb0] sm:$0xf] }
  0xf7   : > { %v600_v4 = vsub.f32 %v596_v30, %v598_v2  ;;  %v2064_v30 = vld [vmem:[#allocation10 + $0xd8] sm:$0xf0]  ;;  %v2224_v1 = vld [vmem:[#allocation10 + $0xb4] sm:$0xf]  ;;  %v1991_v50 = vor.u32 %v2211_v41, %v1990_v40  ;;  %v2024_v40 = vld [vmem:[#allocation10 + $0x88] sm:$0xf0] }
  0xf8   : > { %v601_v5 = vmax.f32 %v599_v3, 0.0  ;;  %1244 = vmatpush.bf16.msrb.mxu3 %v2079_v38  ;;  %v2063_v3 = vor.u32 %v2229_v57, %v2062_v56  ;;  %1257 = vmatpush.bf16.msra.mxu0 %v2019_v63  ;;  %v2208_v63 = vld [vmem:[#allocation10 + $0x34] sm:$0xf] }
  0xf9   : > { %v602_v6 = vmax.f32 %v600_v4, 0.0  ;;  %v2006_v4 = vld [vmem:[#allocation10 + $0x60] sm:$0xf] }
  0xfa   : > { %v605_v7 = vadd.f32 1e-05, %v601_v5  ;;  %v2215_v5 = vld [vmem:[#allocation10 + $0x64] sm:$0xf0] }
  0xfb   : > { %v606_v8 = vadd.f32 1e-05, %v602_v6  ;;  %v2214_v6 = vld [vmem:[#allocation10 + $0x64] sm:$0xf] }
  0xfc   : > { %2355 = vrsqrt.f32 %v605_v7  ;;  %vm613_vm3 = vweird.f32 %v605_v7  ;;  %1245 = vmatpush.bf16.msrb.mxu3 %v2071_v48  ;;  %v1992_v48 = vld [vmem:[#allocation10 + $0x48] sm:$0xf0] }
  0xfd   : > { %2357 = vrsqrt.f32 %v606_v8  ;;  %vm623_vm5 = vweird.f32 %v606_v8 }
 0x100   : > { %1246 = vmatpush.bf16.msrb.mxu3 %v2063_v3 }
 0x102   : > { %v2356_v9 = vpop.eup %2355 }
 0x103   : > { %v2358_v10 = vpop.eup %2357  ;;  %v608_v11 = vmul.f32 %v2356_v9, %v605_v7  ;;  %vm614_vm1 = vweird.f32 %v2356_v9 }
 0x104   : > { %v618_v12 = vmul.f32 %v2358_v10, %v606_v8  ;;  %vm624_vm2 = vweird.f32 %v2358_v10  ;;  %vm615_vm4 = vmor %vm613_vm3, %vm614_vm1 }
 0x105   : > { %v609_v13 = vmul.f32 %v2356_v9, %v608_v11  ;;  %vm625_vm6 = vmor %vm623_vm5, %vm624_vm2  ;;  %v2007_v11 = vor.u32 %v2215_v5, %v2006_v4  ;;  %v2222_v4 = vld [vmem:[#allocation10 + $0xa4] sm:$0xf]  ;;  %v2040_v5 = vld [vmem:[#allocation10 + $0xa8] sm:$0xf0] }
 0x106   : > { %v619_v14 = vmul.f32 %v2358_v10, %v618_v12  ;;  %v2008_v12 = vld [vmem:[#allocation10 + $0x68] sm:$0xf0] }
 0x107   : > { %v610_v15 = vmul.f32 0.5, %v609_v13  ;;  %v2054_v13 = vld [vmem:[#allocation10 + $0xc0] sm:$0xf]  ;;  %1232 = vmatpush.bf16.msrb.mxu2 %v2007_v11 }
 0x108   : > { %v620_v16 = vmul.f32 0.5, %v619_v14  ;;  %v2067_v14 = vor.u32 %v2228_v0, %v2064_v30  ;;  %v1984_v0 = vld [vmem:[#allocation10 + $0x38] sm:$0xf0] }
 0x109   : > { %v611_v17 = vsub.f32 1.5, %v610_v15  ;;  %v2011_v15 = vor.u32 %v2214_v6, %v2008_v12 }
 0x10a   : > { %v621_v18 = vsub.f32 1.5, %v620_v16  ;;  %v2227_v16 = vld [vmem:[#allocation10 + $0xc4] sm:$0xf0]  ;;  %1272 = vmatpush.bf16.msra.mxu1 %v2067_v14  ;;  %v2221_v14 = vld [vmem:[#allocation10 + $0x94] sm:$0xf0] }
 0x10b   : > { %v612_v19 = vmul.f32 %v2356_v9, %v611_v17  ;;  %v2226_v17 = vld [vmem:[#allocation10 + $0xc4] sm:$0xf]  ;;  %1258 = vmatpush.bf16.msra.mxu0 %v2011_v15  ;;  %v1974_v15 = vld [vmem:[#allocation10 + $0x20] sm:$0xf] }
 0x10c   : > { %v622_v21 = vmul.f32 %v2358_v10, %v621_v18  ;;  %v2056_v18 = vld [vmem:[#allocation10 + $0xc8] sm:$0xf0] }
 0x10d   : > { %v616_v22 = vsel %vm615_vm4, %v2356_v9, %v612_v19  ;;  %v2059_v36 = vor.u32 %v2226_v17, %v2056_v18  ;;  %v2043_v18 = vor.u32 %v2222_v4, %v2040_v5 }
 0x10e   : > { %v627_v24 = vmul.f32 %v616_v22, %v603_v20  ;;  %v626_v25 = vsel %vm625_vm6, %v2358_v10, %v622_v21 }
 0x10f   : > { %v628_v26 = vmul.f32 %v626_v25, %v604_v23  ;;  %v1998_v23 = vld [vmem:[#allocation10 + $0x50] sm:$0xf]  ;;  %v2055_v25 = vor.u32 %v2227_v16, %v2054_v13  ;;  %1273 = vmatpush.bf16.msra.mxu1 %v2059_v36  ;;  %v1987_v13 = vor.u32 %v2208_v63, %v1984_v0  ;;  %v2207_v16 = vld [vmem:[#allocation10 + $0x24] sm:$0xf0]  ;;  %v2204_v36 = vld [vmem:[#allocation10 + $0x14] sm:$0xf] }
 0x110   : > { %v629_v27 = vpack.c.bf16 %v627_v24, %v627_v24  ;;  %v2213_v24 = vld [vmem:[#allocation10 + $0x54] sm:$0xf0] }
 0x111   : > { %v630_v28 = vpack.c.bf16 %v628_v26, %v628_v26  ;;  %v1999_v26 = vor.u32 %v2213_v24, %v1998_v23  ;;  %1247 = vmatpush.bf16.msrb.mxu3 %v2055_v25  ;;  %v2220_v23 = vld [vmem:[#allocation10 + $0x94] sm:$0xf]  ;;  %v2032_v24 = vld [vmem:[#allocation10 + $0x98] sm:$0xf0] }
 0x112   : > { %837 = vmatmul.bf16.vlgmr.msra.gmra.mxu2 %v629_v27  ;;  %863 = vmatmul.bf16.vlgmr.msrb.gmra.mxu0 %v629_v27  ;;  %v2212_v27 = vld [vmem:[#allocation10 + $0x54] sm:$0xf] }
 0x113   : > { %850 = vmatmul.bf16.vlgmr.msra.gmra.mxu3 %v630_v28  ;;  %876 = vmatmul.bf16.vlgmr.msrb.gmra.mxu1 %v630_v28  ;;  %v2000_v28 = vld [vmem:[#allocation10 + $0x58] sm:$0xf0] }
 0x114   : > { %v2003_v38 = vor.u32 %v2212_v27, %v2000_v28  ;;  %1233 = vmatpush.bf16.msrb.mxu2 %v1999_v26  ;;  %v1975_v26 = vor.u32 %v2207_v16, %v1974_v15  ;;  %v2022_v27 = vld [vmem:[#allocation10 + $0x80] sm:$0xf] }
 0x116   : > { %1259 = vmatpush.bf16.msra.mxu0 %v2003_v38  ;;  %v1968_v38 = vld [vmem:[#allocation10 + $0x18] sm:$0xf0] }
 0x118   : > { %1234 = vmatpush.bf16.msrb.mxu2 %v1991_v50 }
 0x18f   : > { %v864_v31 = vpop.f32.mrf.mxu0 }
 0x190   : > { %v865_v32 = vadd.f32 %v864_v31, %v666_v29  ;;  %v877_v33 = vpop.f32.mrf.mxu1 }
 0x192   : > { %v2869_v37 = vadd.f32 %v877_v33, %v865_v32 }
 0x194   : > { %v887_v46 = vrot.slane %v2869_v37, 4  ;;  %v896_v47 = vmul.f32 %v2869_v37, %v2869_v37 }
 0x195   : > { %v838_v51 = vpop.f32.mrf.mxu2 }
 0x196   : > { %v888_v58 = vadd.f32 %v887_v46, %v2869_v37  ;;  %v903_v59 = vrot.slane %v896_v47, 4  ;;  %v839_v60 = vadd.f32 %v838_v51, %v665_v34  ;;  %v851_v62 = vpop.f32.mrf.mxu3  ;;  %v2225_v34 = vld [vmem:[#allocation10 + $0xb4] sm:$0xf0] }
 0x197   : > { %v866_v2 = vpop.f32.mrf.mxu0  ;;  %v2047_v49 = vor.u32 %v2225_v34, %v2046_v61 }
 0x198   : > { %v889_v7 = vrot.slane %v888_v58, 2  ;;  %v904_v8 = vadd.f32 %v903_v59, %v896_v47  ;;  %v2875_v9 = vadd.f32 %v851_v62, %v839_v60  ;;  %v879_v10 = vpop.f32.mrf.mxu1  ;;  %v2210_v47 = vld [vmem:[#allocation10 + $0x44] sm:$0xf]  ;;  %v1982_v59 = vld [vmem:[#allocation10 + $0x30] sm:$0xf]  ;;  %v2051_v60 = vor.u32 %v2224_v1, %v2048_v39 }
 0x199   : > { %v1995_v51 = vor.u32 %v2210_v47, %v1992_v48  ;;  %v2209_v62 = vld [vmem:[#allocation10 + $0x34] sm:$0xf0]  ;;  %v2030_v10 = vld [vmem:[#allocation10 + $0x90] sm:$0xf]  ;;  %1248 = vmatpush.bf16.msrb.mxu3 %v2047_v49  ;;  %v2035_v1 = vor.u32 %v2220_v23, %v2032_v24  ;;  %v2218_v39 = vld [vmem:[#allocation10 + $0x84] sm:$0xf] }
 0x19a   : > { %v890_v19 = vadd.f32 %v889_v7, %v888_v58  ;;  %v905_v20 = vrot.slane %v904_v8, 2  ;;  %v881_v21 = vrot.slane %v2875_v9, 4  ;;  %v895_v22 = vmul.f32 %v2875_v9, %v2875_v9  ;;  %v2223_v58 = vld [vmem:[#allocation10 + $0xa4] sm:$0xf0]  ;;  %1274 = vmatpush.bf16.msra.mxu1 %v2051_v60 }
 0x19b   : > { %v2039_v7 = vor.u32 %v2223_v58, %v2038_v53  ;;  %1260 = vmatpush.bf16.msra.mxu0 %v1995_v51 }
 0x19c   : > { %v891_v29 = vrot.slane %v890_v19, 1  ;;  %v906_v31 = vadd.f32 %v905_v20, %v904_v8  ;;  %v882_v32 = vadd.f32 %v881_v21, %v2875_v9  ;;  %v897_v33 = vrot.slane %v895_v22, 4  ;;  %v1976_v20 = vld [vmem:[#allocation10 + $0x28] sm:$0xf0] }
 0x19d   : > { %v840_v35 = vpop.f32.mrf.mxu2  ;;  %v1983_v8 = vor.u32 %v2209_v62, %v1982_v59  ;;  %1249 = vmatpush.bf16.msrb.mxu3 %v2039_v7 }
 0x19e   : > { %v892_v42 = vadd.f32 %v891_v29, %v890_v19  ;;  %v907_v43 = vrot.slane %v906_v31, 1  ;;  %v883_v44 = vrot.slane %v882_v32, 2  ;;  %v898_v45 = vadd.f32 %v897_v33, %v895_v22  ;;  %v853_v46 = vpop.f32.mrf.mxu3  ;;  %v2206_v19 = vld [vmem:[#allocation10 + $0x24] sm:$0xf]  ;;  %v2205_v33 = vld [vmem:[#allocation10 + $0x14] sm:$0xf0]  ;;  %1275 = vmatpush.bf16.msra.mxu1 %v2043_v18 }
 0x19f   : > { %1235 = vmatpush.bf16.msrb.mxu2 %v1983_v8  ;;  %1261 = vmatpush.bf16.msra.mxu0 %v1987_v13  ;;  %v2031_v29 = vor.u32 %v2221_v14, %v2030_v10  ;;  %v2219_v35 = vld [vmem:[#allocation10 + $0x84] sm:$0xf0]  ;;  %v2027_v46 = vor.u32 %v2218_v39, %v2024_v40 }
 0x1a0   : > { %v2882_v54 = vmul.f32 %v892_v42, %v2858_v52  ;;  %v908_v55 = vadd.f32 %v907_v43, %v906_v31  ;;  %v884_v56 = vadd.f32 %v883_v44, %v882_v32  ;;  %v899_v57 = vrot.slane %v898_v45, 2  ;;  %v1966_v32 = vld [vmem:[#allocation10 + $0x10] sm:$0xf] }
 0x1a1   : > { %v1979_v31 = vor.u32 %v2206_v19, %v1976_v20  ;;  %v1967_v42 = vor.u32 %v2205_v33, %v1966_v32  ;;  %1250 = vmatpush.bf16.msrb.mxu3 %v2031_v29  ;;  %v2023_v43 = vor.u32 %v2219_v35, %v2022_v27  ;;  %v1971_v44 = vor.u32 %v2204_v36, %v1968_v38  ;;  %v2203_v32 = vld [vmem:[#allocation10 + $0x4] sm:$0xf0]  ;;  %v2202_v33 = vld [vmem:[#allocation10 + $0x4] sm:$0xf]  ;;  %v1960_v36 = vld [vmem:[#allocation10 + $0x8] sm:$0xf0] }
 0x1a2   : > { %v910_v30 = vmul.f32 %v908_v55, %v2858_v52  ;;  %v912_v2 = vmul.f32 %v2882_v54, %v2882_v54  ;;  %v885_v3 = vrot.slane %v884_v56, 1  ;;  %v900_v6 = vadd.f32 %v899_v57, %v898_v45  ;;  %1276 = vmatpush.bf16.msra.mxu1 %v2035_v1 }
 0x1a3   : > { %1236 = vmatpush.bf16.msrb.mxu2 %v1975_v26  ;;  %1262 = vmatpush.bf16.msra.mxu0 %v1979_v31  ;;  %v918_v58 = vsub.f32 %v2869_v37, %v2882_v54  ;;  %v1958_v31 = vld [vmem:[#allocation10] sm:$0xf]  ;;  %v1963_v38 = vor.u32 %v2202_v33, %v1960_v36 }
 0x1a4   : > { %v914_v11 = vsub.f32 %v910_v30, %v912_v2  ;;  %v886_v12 = vadd.f32 %v885_v3, %v884_v56  ;;  %v901_v17 = vrot.slane %v900_v6, 1  ;;  %v1959_v35 = vor.u32 %v2203_v32, %v1958_v31 }
 0x1a5   : > { %1251 = vmatpush.bf16.msrb.mxu3 %v2023_v43 }
 0x1a6   : > { %v916_v21 = vmax.f32 %v914_v11, 0.0  ;;  %v2888_v22 = vmul.f32 %v886_v12, %v2858_v52  ;;  %v902_v25 = vadd.f32 %v901_v17, %v900_v6  ;;  %1277 = vmatpush.bf16.msra.mxu1 %v2027_v46 }
 0x1a7   : > { %1237 = vmatpush.bf16.msrb.mxu2 %v1967_v42  ;;  %1263 = vmatpush.bf16.msra.mxu0 %v1971_v44 }
 0x1a8   : > { %v920_v28 = vadd.f32 1e-05, %v916_v21  ;;  %v911_v61 = vmul.f32 %v2888_v22, %v2888_v22  ;;  %v909_v34 = vmul.f32 %v902_v25, %v2858_v52  ;;  %v917_v4 = vsub.f32 %v2875_v9, %v2888_v22 }
 0x1aa   : > { %2359 = vrsqrt.f32 %v920_v28  ;;  %v913_v41 = vsub.f32 %v909_v34, %v911_v61  ;;  %vm937_vm8 = vweird.f32 %v920_v28 }
 0x1ab   : > { %1238 = vmatpush.bf16.msrb.mxu2 %v1959_v35  ;;  %1264 = vmatpush.bf16.msra.mxu0 %v1963_v38 }
 0x1ac   : > { %v915_v45 = vmax.f32 %v913_v41, 0.0 }
 0x1ae   : > { %v919_v47 = vadd.f32 1e-05, %v915_v45 }
 0x1b0   : > { %v2360_v48 = vpop.eup %2359  ;;  %2361 = vrsqrt.f32 %v919_v47  ;;  %vm927_vm11 = vweird.f32 %v919_v47 }
 0x1b1   : > { %v932_v49 = vmul.f32 %v2360_v48, %v920_v28  ;;  %vm938_vm7 = vweird.f32 %v2360_v48 }
 0x1b2   : > { %vm939_vm9 = vmor %vm937_vm8, %vm938_vm7 }
 0x1b3   : > { %v933_v50 = vmul.f32 %v2360_v48, %v932_v49 }
 0x1b5   : > { %v934_v51 = vmul.f32 0.5, %v933_v50 }
 0x1b6   : > { %v2362_v53 = vpop.eup %2361 }
 0x1b7   : > { %v935_v55 = vsub.f32 1.5, %v934_v51  ;;  %v922_v56 = vmul.f32 %v2362_v53, %v919_v47  ;;  %vm928_vm10 = vweird.f32 %v2362_v53 }
 0x1b8   : > { %vm929_vm12 = vmor %vm927_vm11, %vm928_vm10 }
 0x1b9   : > { %v936_v57 = vmul.f32 %v2360_v48, %v935_v55  ;;  %v923_v59 = vmul.f32 %v2362_v53, %v922_v56 }
 0x1bb   : > { %v940_v60 = vsel %vm939_vm9, %v2360_v48, %v936_v57  ;;  %v924_v63 = vmul.f32 0.5, %v923_v59 }
 0x1bc   : > { %v2895_v62 = vmul.f32 %v940_v60, %v918_v58 }
 0x1bd   : > { %v925_v30 = vsub.f32 1.5, %v924_v63 }
 0x1be   : > { %v2898_v0 = vmul.f32 0.70710677, %v2895_v62 }
 0x1bf   : > { %v926_v3 = vmul.f32 %v2362_v53, %v925_v30 }
 0x1c0   : > { %v987_v2 = vmul.f32 %v2898_v0, %v2898_v0 }
 0x1c1   : > { %v930_v54 = vsel %vm929_vm12, %v2362_v53, %v926_v3 }
 0x1c2   : > { %v988_v37 = vmin.f32 %v987_v2, 16.0  ;;  %v2904_v5 = vmul.f32 %v930_v54, %v917_v4 }
 0x1c4   : > { %v989_v6 = vmul.f32 2.1237322e-06, %v988_v37  ;;  %v1000_v7 = vmul.f32 3.8918573e-05, %v988_v37  ;;  %v2907_v8 = vmul.f32 0.70710677, %v2904_v5 }
 0x1c6   : > { %v990_v10 = vadd.f32 0.00028619796, %v989_v6  ;;  %v1001_v11 = vadd.f32 0.001143296, %v1000_v7  ;;  %v947_v12 = vmul.f32 %v2907_v8, %v2907_v8 }
 0x1c8   : > { %v991_v13 = vmul.f32 %v990_v10, %v988_v37  ;;  %v1002_v14 = vmul.f32 %v1001_v11, %v988_v37  ;;  %v948_v15 = vmin.f32 %v947_v12, 16.0 }
 0x1ca   : > { %v992_v16 = vadd.f32 0.0036580483, %v991_v13  ;;  %v1003_v9 = vadd.f32 0.014752088, %v1002_v14  ;;  %v949_v17 = vmul.f32 2.1237322e-06, %v948_v15 }
 0x1cb   : > { %v960_v18 = vmul.f32 3.8918573e-05, %v948_v15 }
 0x1cc   : > { %v1004_v19 = vmul.f32 %v1003_v9, %v988_v37  ;;  %v950_v20 = vadd.f32 0.00028619796, %v949_v17  ;;  %v993_v22 = vmul.f32 %v992_v16, %v988_v37  ;;  %v944_v17 = vmul.f32 0.5, %v2895_v62 }
 0x1cd   : > { %v961_v21 = vadd.f32 0.001143296, %v960_v18 }
 0x1ce   : > { %v1005_v23 = vadd.f32 0.112945676, %v1004_v19  ;;  %v951_v24 = vmul.f32 %v950_v20, %v948_v15  ;;  %v994_v28 = vadd.f32 0.05243302, %v993_v22 }
 0x1cf   : > { %v962_v25 = vmul.f32 %v961_v21, %v948_v15 }
 0x1d0   : > { %v1006_v26 = vmul.f32 %v1005_v23, %v988_v37  ;;  %v952_v29 = vadd.f32 0.0036580483, %v951_v24  ;;  %v995_v42 = vmul.f32 %v994_v28, %v988_v37 }
 0x1d1   : > { %v963_v27 = vadd.f32 0.014752088, %v962_v25  ;;  %v943_v25 = vmul.f32 0.5, %v2904_v5 }
 0x1d2   : > { %v1007_v61 = vadd.f32 0.4994258, %v1006_v26  ;;  %v953_v41 = vmul.f32 %v952_v29, %v948_v15  ;;  %v996_v46 = vadd.f32 0.18741608, %v995_v42 }
 0x1d3   : > { %v964_v34 = vmul.f32 %v963_v27, %v948_v15 }
 0x1d4   : > { %v1008_v1 = vmul.f32 %v1007_v61, %v988_v37  ;;  %v954_v45 = vadd.f32 0.05243302, %v953_v41  ;;  %v997_v51 = vmul.f32 %v996_v46, %v988_v37  ;;  %v2249_v46 = vld [vmem:[#allocation11 + $0x78] sm:$0xff] }
 0x1d5   : > { %v965_v39 = vadd.f32 0.112945676, %v964_v34  ;;  %1580 = vmatpush.bf16.msra.mxu3 %v2249_v46 }
 0x1d6   : > { %v1009_v40 = vadd.f32 1.0, %v1008_v1  ;;  %v955_v50 = vmul.f32 %v954_v45, %v948_v15  ;;  %v998_v58 = vadd.f32 1.1283791, %v997_v51 }
 0x1d7   : > { %v966_v43 = vmul.f32 %v965_v39, %v948_v15 }
 0x1d8   : > { %2363 = vrcp.f32 %v1009_v40  ;;  %v1021_v56 = vand.u32 2147483648, %v1009_v40  ;;  %v956_v57 = vadd.f32 0.18741608, %v955_v50  ;;  %v1019_v60 = vand.u32 2147483647, %v1009_v40 }
 0x1d9   : > { %v967_v44 = vadd.f32 0.4994258, %v966_v43  ;;  %vm1015_vm14 = vweird.f32 %v1009_v40  ;;  %v999_v54 = vmul.f32 %v998_v58, %v2898_v0 }
 0x1da   : > { %v1022_v2 = vor.u32 1.1754944e-38, %v1021_v56  ;;  %v957_v3 = vmul.f32 %v956_v57, %v948_v15  ;;  %vm1020_vm0 = vcmp.eq.f32.partialorder %v1019_v60, 8.507059e+37 }
 0x1db   : > { %v968_v47 = vmul.f32 %v967_v44, %v948_v15 }
 0x1dc   : > { %v958_v12 = vadd.f32 1.1283791, %v957_v3 }
 0x1dd   : > { %v969_v48 = vadd.f32 1.0, %v968_v47  ;;  %v2241_v47 = vld [vmem:[#allocation11 + $0x38] sm:$0xff] }
 0x1de   : > { %v2364_v49 = vpop.eup %2363  ;;  %v959_v0 = vmul.f32 %v958_v12, %v2907_v8  ;;  %v1065_v8 = vld [vmem:[%s2998_s6] sm:$0x3]  ;;  %1567 = vmatpush.bf16.msra.mxu2 %v2241_v47 }
 0x1df   : > { %v1011_v53 = vmul.f32 %v2364_v49, %v1009_v40  ;;  %2365 = vrcp.f32 %v969_v48  ;;  %vm1016_vm13 = vweird.f32 %v2364_v49  ;;  %v981_v11 = vand.u32 2147483648, %v969_v48 }
 0x1e0   : > { %vm1017_vm15 = vmor %vm1015_vm14, %vm1016_vm13  ;;  %v979_v14 = vand.u32 2147483647, %v969_v48  ;;  %vm975_vm2 = vweird.f32 %v969_v48  ;;  %v1068_v61 = vperm.slane %v1065_v8, 1  ;;  %v1067_v1 = vperm.slane %v1065_v8, 0  ;;  %v2243_v8 = vld [vmem:[#allocation11 + $0x48] sm:$0xff] }
 0x1e1   : > { %v1012_v55 = vsub.f32 1.0, %v1011_v53  ;;  %v982_v15 = vor.u32 1.1754944e-38, %v981_v11  ;;  %v2248_v53 = vld [vmem:[#allocation11 + $0x70] sm:$0xff] }
 0x1e2   : > { %vm980_vm4 = vcmp.eq.f32.partialorder %v979_v14, 8.507059e+37  ;;  %1581 = vmatpush.bf16.msra.mxu3 %v2248_v53  ;;  %v2246_v14 = vld [vmem:[#allocation11 + $0x60] sm:$0xff] }
 0x1e3   : > { %v1013_v59 = vmul.f32 %v2364_v49, %v1012_v55  ;;  %v2240_v55 = vld [vmem:[#allocation11 + $0x30] sm:$0xff] }
 0x1e4   : > { %1568 = vmatpush.bf16.msra.mxu2 %v2240_v55 }
 0x1e5   : > { %v2366_v63 = vpop.eup %2365  ;;  %v1014_v30 = vadd.f32 %v2364_v49, %v1013_v59 }
 0x1e6   : > { %v971_v4 = vmul.f32 %v2366_v63, %v969_v48  ;;  %vm976_vm1 = vweird.f32 %v2366_v63 }
 0x1e7   : > { %v1018_v6 = vsel %vm1017_vm15, %v2364_v49, %v1014_v30  ;;  %vm977_vm3 = vmor %vm975_vm2, %vm976_vm1 }
 0x1e8   : > { %v1023_v37 = vsel %vm1020_vm0, %v1022_v2, %v1018_v6  ;;  %v972_v7 = vsub.f32 1.0, %v971_v4  ;;  %v2247_v4 = vld [vmem:[#allocation11 + $0x68] sm:$0xff] }
 0x1e9   : > { %v1024_v10 = vmul.f32 %v1023_v37, %v999_v54  ;;  %v2239_v54 = vld [vmem:[#allocation11 + $0x28] sm:$0xff]  ;;  %1582 = vmatpush.bf16.msra.mxu3 %v2247_v4 }
 0x1ea   : > { %v973_v13 = vmul.f32 %v2366_v63, %v972_v7  ;;  %1569 = vmatpush.bf16.msra.mxu2 %v2239_v54 }
 0x1eb   : > { %v1955_v16 = vclamps-f32 %v1024_v10, 1.0 }
 0x1ec   : > { %v974_v9 = vadd.f32 %v2366_v63, %v973_v13 }
 0x1ed   : > { %v1028_v18 = vadd.f32 1.0, %v1955_v16  ;;  %v2238_v16 = vld [vmem:[#allocation11 + $0x20] sm:$0xff]  ;;  %1583 = vmatpush.bf16.msra.mxu3 %v2246_v14 }
 0x1ee   : > { %v978_v19 = vsel %vm977_vm3, %v2366_v63, %v974_v9  ;;  %1570 = vmatpush.bf16.msra.mxu2 %v2238_v16 }
 0x1ef   : > { %v1030_v20 = vmul.f32 %v1028_v18, %v944_v17  ;;  %v983_v21 = vsel %vm980_vm4, %v982_v15, %v978_v19 }
 0x1f0   : > { %v984_v22 = vmul.f32 %v983_v21, %v959_v0  ;;  %v2237_v21 = vld [vmem:[#allocation11 + $0x18] sm:$0xff] }
 0x1f1   : > { %v1032_v23 = vpack.c.bf16 %v1030_v20, %v1030_v20  ;;  %v2245_v20 = vld [vmem:[#allocation11 + $0x58] sm:$0xff] }
 0x1f2   : > { %v1954_v24 = vclamps-f32 %v984_v22, 1.0  ;;  %1584 = vmatpush.bf16.msra.mxu3 %v2245_v20  ;;  %1571 = vmatpush.bf16.msra.mxu2 %v2237_v21 }
 0x1f3   : > { %1252 = vmatmul.bf16.vlgmr.msrb.gmra.mxu3 %v1032_v23  ;;  %1278 = vmatmul.bf16.vlgmr.msra.gmra.mxu1 %v1032_v23 }
 0x1f4   : > { %v1027_v26 = vadd.f32 1.0, %v1954_v24 }
 0x1f6   : > { %v1029_v27 = vmul.f32 %v1027_v26, %v943_v25  ;;  %v2244_v26 = vld [vmem:[#allocation11 + $0x50] sm:$0xff] }
 0x1f7   : > { %1585 = vmatpush.bf16.msra.mxu3 %v2244_v26 }
 0x1f8   : > { %v1031_v28 = vpack.c.bf16 %v1029_v27, %v1029_v27  ;;  %v2236_v27 = vld [vmem:[#allocation11 + $0x10] sm:$0xff] }
 0x1f9   : > { %1572 = vmatpush.bf16.msra.mxu2 %v2236_v27 }
 0x1fa   : > { %1239 = vmatmul.bf16.vlgmr.msrb.gmra.mxu2 %v1031_v28  ;;  %1265 = vmatmul.bf16.vlgmr.msra.gmra.mxu0 %v1031_v28 }
 0x1fb   : > { %1586 = vmatpush.bf16.msra.mxu3 %v2243_v8 }
 0x270   : > { %v1279_v62 = vpop.f32.mrf.mxu1 }
 0x276   : > { %v1253_v29 = vpop.f32.mrf.mxu3 }
 0x277   : > { %v1266_v31 = vpop.f32.mrf.mxu0 }
 0x278   : > { %v1267_v32 = vadd.f32 %v1266_v31, %v1068_v61  ;;  %v1281_v33 = vpop.f32.mrf.mxu1  ;;  %v2235_v61 = vld [vmem:[#allocation11 + $0x8] sm:$0xff] }
 0x279   : > { %v2242_v33 = vld [vmem:[#allocation11 + $0x40] sm:$0xff]  ;;  %1573 = vmatpush.bf16.msra.mxu2 %v2235_v61 }
 0x27a   : > { %v2918_v34 = vadd.f32 %v1279_v62, %v1267_v32  ;;  %1587 = vmatpush.bf16.msra.mxu3 %v2242_v33 }
 0x27c   : > { %v1289_v5 = vrot.slane %v2918_v34, 4  ;;  %v1298_v35 = vmul.f32 %v2918_v34, %v2918_v34 }
 0x27d   : > { %v1240_v36 = vpop.f32.mrf.mxu2 }
 0x27e   : > { %v1290_v38 = vadd.f32 %v1289_v5, %v2918_v34  ;;  %v1305_v39 = vrot.slane %v1298_v35, 4  ;;  %v1241_v40 = vadd.f32 %v1240_v36, %v1067_v1  ;;  %v1255_v41 = vpop.f32.mrf.mxu3 }
 0x27f   : > { %v1268_v42 = vpop.f32.mrf.mxu0 }
 0x280   : > { %v1291_v43 = vrot.slane %v1290_v38, 2  ;;  %v1306_v44 = vadd.f32 %v1305_v39, %v1298_v35  ;;  %v2924_v45 = vadd.f32 %v1253_v29, %v1241_v40 }
 0x282   : > { %v1292_v48 = vadd.f32 %v1291_v43, %v1290_v38  ;;  %v1307_v49 = vrot.slane %v1306_v44, 2  ;;  %v1283_v50 = vrot.slane %v2924_v45, 4  ;;  %v1297_v51 = vmul.f32 %v2924_v45, %v2924_v45 }
 0x284   : > { %v1293_v56 = vrot.slane %v1292_v48, 1  ;;  %v1308_v57 = vadd.f32 %v1307_v49, %v1306_v44  ;;  %v1284_v58 = vadd.f32 %v1283_v50, %v2924_v45  ;;  %v1299_v59 = vrot.slane %v1297_v51, 4 }
 0x285   : > { %v1242_v60 = vpop.f32.mrf.mxu2 }
 0x286   : > { %v1294_v63 = vadd.f32 %v1293_v56, %v1292_v48  ;;  %v1309_v30 = vrot.slane %v1308_v57, 1  ;;  %v1285_v2 = vrot.slane %v1284_v58, 2  ;;  %v1300_v3 = vadd.f32 %v1299_v59, %v1297_v51 }
 0x288   : > { %v1296_v6 = vmul.f32 %v1294_v63, %v2858_v52  ;;  %v1310_v37 = vadd.f32 %v1309_v30, %v1308_v57  ;;  %v1286_v7 = vadd.f32 %v1285_v2, %v1284_v58  ;;  %v1301_v10 = vrot.slane %v1300_v3, 2 }
 0x28a   : > { %v1312_v11 = vmul.f32 %v1310_v37, %v2858_v52  ;;  %v1314_v12 = vmul.f32 %v1296_v6, %v1296_v6  ;;  %v1287_v13 = vrot.slane %v1286_v7, 1  ;;  %v1302_v9 = vadd.f32 %v1301_v10, %v1300_v3 }
 0x28b   : > { %v1320_v39 = vsub.f32 %v2918_v34, %v1296_v6 }
 0x28c   : > { %v1316_v17 = vsub.f32 %v1312_v11, %v1314_v12  ;;  %v1288_v18 = vadd.f32 %v1287_v13, %v1286_v7  ;;  %v1303_v15 = vrot.slane %v1302_v9, 1 }
 0x28e   : > { %v1318_v0 = vmax.f32 %v1316_v17, 0.0  ;;  %v1295_v19 = vmul.f32 %v1288_v18, %v2858_v52  ;;  %v1304_v22 = vadd.f32 %v1303_v15, %v1302_v9  ;;  %v2234_v18 = vld [vmem:[#allocation11] sm:$0xff] }
 0x28f   : > { %1574 = vmatpush.bf16.msra.mxu2 %v2234_v18 }
 0x290   : > { %v1322_v23 = vadd.f32 1e-05, %v1318_v0  ;;  %v1313_v24 = vmul.f32 %v1295_v19, %v1295_v19  ;;  %v1311_v25 = vmul.f32 %v1304_v22, %v2858_v52  ;;  %v1319_v49 = vsub.f32 %v2924_v45, %v1295_v19 }
 0x292   : > { %2367 = vrsqrt.f32 %v1322_v23  ;;  %v1315_v28 = vsub.f32 %v1311_v25, %v1313_v24  ;;  %vm1339_vm6 = vweird.f32 %v1322_v23 }
 0x294   : > { %v1317_v62 = vmax.f32 %v1315_v28, 0.0 }
 0x296   : > { %v1321_v29 = vadd.f32 1e-05, %v1317_v62 }
 0x298   : > { %v2368_v31 = vpop.eup %2367  ;;  %2369 = vrsqrt.f32 %v1321_v29  ;;  %vm1329_vm9 = vweird.f32 %v1321_v29 }
 0x299   : > { %v1334_v32 = vmul.f32 %v2368_v31, %v1322_v23  ;;  %vm1340_vm5 = vweird.f32 %v2368_v31 }
 0x29a   : > { %vm1341_vm7 = vmor %vm1339_vm6, %vm1340_vm5 }
 0x29b   : > { %v1335_v1 = vmul.f32 %v2368_v31, %v1334_v32 }
 0x29d   : > { %v1336_v52 = vmul.f32 0.5, %v1335_v1 }
 0x29e   : > { %v2370_v5 = vpop.eup %2369 }
 0x29f   : > { %v1337_v35 = vsub.f32 1.5, %v1336_v52  ;;  %v1324_v36 = vmul.f32 %v2370_v5, %v1321_v29  ;;  %vm1330_vm8 = vweird.f32 %v2370_v5 }
 0x2a0   : > { %vm1331_vm10 = vmor %vm1329_vm9, %vm1330_vm8 }
 0x2a1   : > { %v1338_v38 = vmul.f32 %v2368_v31, %v1337_v35  ;;  %v1325_v40 = vmul.f32 %v2370_v5, %v1324_v36 }
 0x2a3   : > { %v1342_v41 = vsel %vm1341_vm7, %v2368_v31, %v1338_v38  ;;  %v1326_v43 = vmul.f32 0.5, %v1325_v40 }
 0x2a4   : > { %v2935_v42 = vmul.f32 %v1342_v41, %v1320_v39 }
 0x2a5   : > { %v1327_v46 = vsub.f32 1.5, %v1326_v43 }
 0x2a6   : > { %v2938_v44 = vmul.f32 0.70710677, %v2935_v42 }
 0x2a7   : > { %v1328_v48 = vmul.f32 %v2370_v5, %v1327_v46 }
 0x2a8   : > { %v1389_v47 = vmul.f32 %v2938_v44, %v2938_v44 }
 0x2a9   : > { %v1332_v50 = vsel %vm1331_vm10, %v2370_v5, %v1328_v48 }
 0x2aa   : > { %v1390_v34 = vmin.f32 %v1389_v47, 16.0  ;;  %v2943_v51 = vmul.f32 %v1332_v50, %v1319_v49 }
 0x2ac   : > { %v1391_v53 = vmul.f32 2.1237322e-06, %v1390_v34  ;;  %v1402_v55 = vmul.f32 3.8918573e-05, %v1390_v34  ;;  %v2946_v56 = vmul.f32 0.70710677, %v2943_v51 }
 0x2ae   : > { %v1392_v57 = vadd.f32 0.00028619796, %v1391_v53  ;;  %v1403_v58 = vadd.f32 0.001143296, %v1402_v55  ;;  %v1349_v59 = vmul.f32 %v2946_v56, %v2946_v56 }
 0x2b0   : > { %v1393_v60 = vmul.f32 %v1392_v57, %v1390_v34  ;;  %v1404_v63 = vmul.f32 %v1403_v58, %v1390_v34  ;;  %v1350_v30 = vmin.f32 %v1349_v59, 16.0  ;;  %v1346_v58 = vmul.f32 0.5, %v2935_v42 }
 0x2b2   : > { %v1405_v2 = vadd.f32 0.014752088, %v1404_v63  ;;  %v1394_v45 = vadd.f32 0.0036580483, %v1393_v60  ;;  %v1351_v3 = vmul.f32 2.1237322e-06, %v1350_v30 }
 0x2b3   : > { %v1362_v4 = vmul.f32 3.8918573e-05, %v1350_v30 }
 0x2b4   : > { %v1406_v54 = vmul.f32 %v1405_v2, %v1390_v34  ;;  %v1352_v6 = vadd.f32 0.00028619796, %v1351_v3  ;;  %v1395_v10 = vmul.f32 %v1394_v45, %v1390_v34 }
 0x2b5   : > { %v1363_v37 = vadd.f32 0.001143296, %v1362_v4 }
 0x2b6   : > { %v1407_v7 = vadd.f32 0.112945676, %v1406_v54  ;;  %v1353_v11 = vmul.f32 %v1352_v6, %v1350_v30  ;;  %v1396_v17 = vadd.f32 0.05243302, %v1395_v10  ;;  %v1345_v54 = vmul.f32 0.5, %v2943_v51 }
 0x2b7   : > { %v1364_v12 = vmul.f32 %v1363_v37, %v1350_v30 }
 0x2b8   : > { %v1408_v13 = vmul.f32 %v1407_v7, %v1390_v34  ;;  %v1354_v9 = vadd.f32 0.0036580483, %v1353_v11  ;;  %v1397_v22 = vmul.f32 %v1396_v17, %v1390_v34 }
 0x2b9   : > { %v1365_v14 = vadd.f32 0.014752088, %v1364_v12 }
 0x2ba   : > { %v1409_v16 = vadd.f32 0.4994258, %v1408_v13  ;;  %v1355_v21 = vmul.f32 %v1354_v9, %v1350_v30  ;;  %v1398_v26 = vadd.f32 0.18741608, %v1397_v22 }
 0x2bb   : > { %v1366_v15 = vmul.f32 %v1365_v14, %v1350_v30 }
 0x2bc   : > { %v1410_v0 = vmul.f32 %v1409_v16, %v1390_v34  ;;  %v1356_v25 = vadd.f32 0.05243302, %v1355_v21  ;;  %v1399_v61 = vmul.f32 %v1398_v26, %v1390_v34 }
 0x2bd   : > { %v1367_v19 = vadd.f32 0.112945676, %v1366_v15 }
 0x2be   : > { %v1411_v20 = vadd.f32 1.0, %v1410_v0  ;;  %v1357_v8 = vmul.f32 %v1356_v25, %v1350_v30  ;;  %v1400_v1 = vadd.f32 1.1283791, %v1399_v61 }
 0x2bf   : > { %v1368_v23 = vmul.f32 %v1367_v19, %v1350_v30 }
 0x2c0   : > { %2371 = vrcp.f32 %v1411_v20  ;;  %v1423_v32 = vand.u32 2147483648, %v1411_v20  ;;  %v1358_v33 = vadd.f32 0.18741608, %v1357_v8  ;;  %v1421_v5 = vand.u32 2147483647, %v1411_v20 }
 0x2c1   : > { %v1369_v24 = vadd.f32 0.4994258, %v1368_v23  ;;  %vm1417_vm12 = vweird.f32 %v1411_v20  ;;  %v1401_v41 = vmul.f32 %v1400_v1, %v2938_v44 }
 0x2c2   : > { %v1424_v38 = vor.u32 1.1754944e-38, %v1423_v32  ;;  %v1359_v39 = vmul.f32 %v1358_v33, %v1350_v30  ;;  %vm1422_vm14 = vcmp.eq.f32.partialorder %v1421_v5, 8.507059e+37 }
 0x2c3   : > { %v1370_v27 = vmul.f32 %v1369_v24, %v1350_v30 }
 0x2c4   : > { %v1360_v34 = vadd.f32 1.1283791, %v1359_v39 }
 0x2c5   : > { %v1371_v28 = vadd.f32 1.0, %v1370_v27 }
 0x2c6   : > { %v2372_v62 = vpop.eup %2371  ;;  %v1361_v44 = vmul.f32 %v1360_v34, %v2946_v56  ;;  %v2352_v56 = vld [vmem:[%s3000_s8] ss:$0 sm:$0xff] }
 0x2c7   : > { %v1413_v29 = vmul.f32 %v2372_v62, %v1411_v20  ;;  %2373 = vrcp.f32 %v1371_v28  ;;  %vm1418_vm11 = vweird.f32 %v2372_v62  ;;  %v1383_v49 = vand.u32 2147483648, %v1371_v28 }
 0x2c8   : > { %vm1419_vm13 = vmor %vm1417_vm12, %vm1418_vm11  ;;  %v1381_v53 = vand.u32 2147483647, %v1371_v28  ;;  %vm1377_vm0 = vweird.f32 %v1371_v28 }
 0x2c9   : > { %v1414_v31 = vsub.f32 1.0, %v1413_v29  ;;  %v1384_v60 = vor.u32 1.1754944e-38, %v1383_v49 }
 0x2ca   : > { %vm1382_vm2 = vcmp.eq.f32.partialorder %v1381_v53, 8.507059e+37 }
 0x2cb   : > { %v1415_v52 = vmul.f32 %v2372_v62, %v1414_v31 }
 0x2cd   : > { %v2374_v35 = vpop.eup %2373  ;;  %v1416_v36 = vadd.f32 %v2372_v62, %v1415_v52 }
 0x2ce   : > { %v1373_v40 = vmul.f32 %v2374_v35, %v1371_v28  ;;  %vm1378_vm15 = vweird.f32 %v2374_v35 }
 0x2cf   : > { %v1420_v43 = vsel %vm1419_vm13, %v2372_v62, %v1416_v36  ;;  %vm1379_vm1 = vmor %vm1377_vm0, %vm1378_vm15 }
 0x2d0   : > { %v1425_v46 = vsel %vm1422_vm14, %v1424_v38, %v1420_v43  ;;  %v1374_v47 = vsub.f32 1.0, %v1373_v40 }
 0x2d1   : > { %v1426_v48 = vmul.f32 %v1425_v46, %v1401_v41 }
 0x2d2   : > { %v1375_v50 = vmul.f32 %v2374_v35, %v1374_v47 }
 0x2d3   : > { %v2085_v55 = vclamps-f32 %v1426_v48, 1.0 }
 0x2d4   : > { %v1376_v57 = vadd.f32 %v2374_v35, %v1375_v50 }
 0x2d5   : > { %v1430_v59 = vadd.f32 1.0, %v2085_v55 }
 0x2d6   : > { %v1380_v63 = vsel %vm1379_vm1, %v2374_v35, %v1376_v57 }
 0x2d7   : > { %v1432_v30 = vmul.f32 %v1430_v59, %v1346_v58  ;;  %v1385_v2 = vsel %vm1382_vm2, %v1384_v60, %v1380_v63 }
 0x2d8   : > { %v1386_v45 = vmul.f32 %v1385_v2, %v1361_v44 }
 0x2d9   : > { %v1434_v3 = vpack.c.bf16 %v1432_v30, %v1432_v30 }
 0x2da   : > { %v2084_v4 = vclamps-f32 %v1386_v45, 1.0 }
 0x2db   : > { %1588 = vmatmul.bf16.vlgmr.msra.gmra.mxu3 %v1434_v3 }
 0x2dc   : > { %v1429_v6 = vadd.f32 1.0, %v2084_v4 }
 0x2de   : > { %v1431_v37 = vmul.f32 %v1429_v6, %v1345_v54 }
 0x2e0   : > { %v1433_v7 = vpack.c.bf16 %v1431_v37, %v1431_v37 }
 0x2e2   : > { %1575 = vmatmul.bf16.vlgmr.msra.gmra.mxu2 %v1433_v7 }
 0x35e   : > { %v1589_v42 = vpop.f32.mrf.mxu3 }
 0x365   : > { %v1576_v10 = vpop.f32.mrf.mxu2 }
 0x366   : > { %v1577_v11 = vadd.f32 %v2352_v56, %v1576_v10  ;;  %v1591_v12 = vpop.f32.mrf.mxu3 }
 0x368   : > { %v1590_v13 = vadd.f32 %v1589_v42, %v1577_v11 }
 0x36a   : > { %v1593_v14 = vmul.f32 %v1590_v13, %v1590_v13 }
 0x36c   : > { %1594 = vadd.xlane.f32.xlu0 %v1593_v14 }
 0x36d   : > { %v1578_v16 = vpop.f32.mrf.mxu2 }
 0x3df   : > { %v1595_v9 = vpop.xlane.xlu0 %1594 }
 0x3e0   : > { %v1596_v51 = vmax.f32 %v1595_v9, 1e-24 }
 0x3e2   : > { %2375 = vrsqrt.f32 %v1596_v51  ;;  %vm1603_vm4 = vweird.f32 %v1596_v51 }
 0x3e8   : > { %v2376_v17 = vpop.eup %2375 }
 0x3e9   : > { %v1598_v18 = vmul.f32 %v2376_v17, %v1596_v51  ;;  %vm1604_vm3 = vweird.f32 %v2376_v17 }
 0x3ea   : > { %vm1605_vm5 = vmor %vm1603_vm4, %vm1604_vm3 }
 0x3eb   : > { %v1599_v15 = vmul.f32 %v2376_v17, %v1598_v18 }
 0x3ed   : > { %v1600_v0 = vmul.f32 0.5, %v1599_v15 }
 0x3ef   : > { %v1601_v19 = vsub.f32 1.5, %v1600_v0 }
 0x3f1   : > { %v1602_v20 = vmul.f32 %v2376_v17, %v1601_v19 }
 0x3f3   : > { %v1606_v21 = vsel %vm1605_vm5, %v2376_v17, %v1602_v20 }
 0x3f4   : > { %v1607_v22 = vmul.f32 %v1606_v21, %v1590_v13 }
 0x3f6   : > { %v1608_v23 = vpack.c.bf16 %v1607_v22, %v1607_v22 }
 0x3f8   : > { %1609 = vst [vmem:[%s430_s1] sm:$0xf] %v1608_v23 }
 0x3f9   : > { %2584 = shalt.err (!%p2581_p9)
}
 0x3fa   : > { %2272 = dma.vmem_to_hbm [thread:$0]  (%p2783_p13), %s1624_s24, 64, %s1626_s2, %s1611_s16  }
 0x3fb PF: > { %s1637_s20 = sand.u32 1, %s2623_s30   ;;  %p3014_p10 = scmp.ge.s32.totalorder %s2635_s12, 2 }
 0x3fc   : > { %s1638_s15 = scalar_lea.sflag [#allocation4], %s1637_s20 }
 0x3fd   : > { %p2295_p11 = pnand %p3014_p10, %p2788_p4 }
 0x3ff   : > { %p2296_p0 = pneg %p2295_p11 }
 0x401   : > { %2618 = dma.done.wait (%p2296_p0), %s1638_s15, 64  }
 0x402   : > { %2620 = vsyncadd (%p2296_p0), %s1638_s15, 4294967232  ;;  %p25_p2 = scmp.ge.s32.totalorder %s2763_s18, 4   ;;  %s3015_s30 = smov %s2627_s10 }
 0x403   : > { %s3016_s10 = smov %s2631_s11  ;;  %s3017_s11 = smov %s2775_s29 }
 0x404   : > { %s3018_s12 = smov %s2763_s18  ;;  %27 = sbr.rel (!%p25_p2) target bundleno = 12 (0xc), region = 121 }
 0x409   :  { %1644 = vsyncpa [#allocation3], 1 }
 0x40a   :  { %1646 = vsyncpa [#allocation3 + $0x1], 1 }
 0x40b   :  { %1647 = vsyncpa [#allocation6], 1 }
 0x40c   :  { %1648 = vsyncpa [#allocation9], 1 }
 0x40d   :  { %1649 = vsyncpa [#allocation12], 1 }
 0x40e   :  { %1650 = vsyncpa [#allocation4], 1 }
 0x40f   :  { %1652 = vsyncpa [#allocation4 + $0x1], 1 }

</bundles_post_ra>
